<compile_context>
chip_gen: v7x
topology: tpu7x:2x2x1
jax: 0.10.0
libtpu: 0.0.40
codegen_flags: <defaults>
</compile_context>

<pallas_src>
import jax
import jax.numpy as jnp
import numpy as np
from jax import lax
from jax.experimental import pallas as pl
from jax.experimental.pallas import tpu as pltpu

BN_EPS = 1e-5
LANE = 128  # feature dims (hidden/out) are zero-padded to one lane tile


def _pick_packing(batch: int, n_nodes: int, target_rows: int = 128) -> int:
    """Largest G dividing `batch` with G * n_nodes <= target_rows.

    Prefers leaving >= 2 grid steps (batch // G >= 2) so the "parallel" batch
    axis can shard across v7x's two TensorCores.
    # TODO(synk): target_rows=256 better fills the 256x256 MXU on v6e/v7x when
    #             batch*n_nodes is large; 128 already saturates v5e's MXU.
    """
    divisors = [g for g in range(1, batch + 1)
                if batch % g == 0 and g * n_nodes <= target_rows]
    if not divisors:
        return 1
    multi_step = [g for g in divisors if batch // g >= 2]
    return max(multi_step) if multi_step else max(divisors)


def _make_kernel(n_graphs: int, n_nodes: int, in_dim: int, out_dim: int):
    inv_n = 1.0 / float(n_nodes)
    n_rows = n_graphs * n_nodes

    def gcn_kernel(x_ref, adj_ref, w_ref, vec_ref, o_ref):
        x = x_ref[...]             # (G*N, in_dim)  unpadded node features
        adj = adj_ref[...]         # (G*N, G*N)     block-diagonal adjacency
        w1 = w_ref[0][:in_dim, :]  # (in_dim, 128)  zero-padded past hidden
        w2 = w_ref[1]              # (128, 128)     zero-padded past out_dim
        vecs = vec_ref[...]        # (4, 128)
        g1, be1 = vecs[0:1, :], vecs[1:2, :]
        g2, be2 = vecs[2:3, :], vecs[3:4, :]

        # Per-graph pooling / broadcast matrices built from 2-D iota:
        #   pool  (G, G*N): averages each graph's N node rows
        #   bcast (G*N, G): scatters per-graph stats back onto node rows
        g_idx = lax.broadcasted_iota(jnp.int32, (n_graphs, n_rows), 0)
        r_idx = lax.broadcasted_iota(jnp.int32, (n_graphs, n_rows), 1)
        d = r_idx - g_idx * n_nodes
        pool = jnp.where((d >= 0) & (d < n_nodes),
                         jnp.float32(inv_n), jnp.float32(0.0))
        r2_idx = lax.broadcasted_iota(jnp.int32, (n_rows, n_graphs), 0)
        c2_idx = lax.broadcasted_iota(jnp.int32, (n_rows, n_graphs), 1)
        d2 = r2_idx - c2_idx * n_nodes
        bcast = jnp.where((d2 >= 0) & (d2 < n_nodes),
                          jnp.float32(1.0), jnp.float32(0.0))

        def batchnorm(h, gamma, beta):
            # Training-mode BN per graph over the node axis; fused single-pass
            # stats (var = E[x^2] - mean^2, clamped at 0).
            mean = jnp.dot(pool, h, preferred_element_type=jnp.float32)
            ex2 = jnp.dot(pool, h * h, preferred_element_type=jnp.float32)
            var = jnp.maximum(ex2 - mean * mean, 0.0)
            scale = lax.rsqrt(var + BN_EPS)
            mean_f = jnp.dot(bcast, mean, preferred_element_type=jnp.float32)
            scale_f = jnp.dot(bcast, scale, preferred_element_type=jnp.float32)
            return (h - mean_f) * scale_f * gamma + beta

        # ---- GCN layer 1: adj @ (x @ W1) -----------------------------------
        # (+b1 omitted: a per-channel constant added before BatchNorm is
        #  cancelled exactly by the mean subtraction.)
        h = jnp.dot(x, w1, preferred_element_type=jnp.float32)
        h = jnp.dot(adj, h, preferred_element_type=jnp.float32)
        h = batchnorm(h, g1, be1)

        # ---- GCN layer 2: adj @ (h @ W2) (+b2 omitted, same reason) --------
        h2 = jnp.dot(h, w2, preferred_element_type=jnp.float32)
        h2 = jnp.dot(adj, h2, preferred_element_type=jnp.float32)
        h2 = batchnorm(h2, g2, be2)

        # ---- tanh + unpadded store (only out_dim lanes hit HBM) ------------
        o_ref[...] = jnp.tanh(h2[:, :out_dim])

    return gcn_kernel


def gcn_forward(x, adj, params, *, target_rows: int = 128):
    """Batched GCN forward.

    x:   (B, N, in_dim) f32
    adj: (B, N, N)      f32
    params: w1 (I,H), b1/g1/be1 (H,), w2 (H,O), b2/g2/be2 (O,)
            (b1/b2 are accepted but unused: they cancel under BatchNorm.)
    returns (B, N, out_dim) f32
    """
    B, N, in_dim = x.shape
    hid = params["w1"].shape[1]
    out_dim = params["w2"].shape[1]
    assert max(in_dim, hid, out_dim) <= LANE, "feature dims must fit one lane tile"

    G = _pick_packing(B, N, target_rows)
    Bg = B // G           # grid length
    Nb = G * N            # packed node rows per grid step

    # Flatten node axis (free metadata reshape; graphs stay contiguous).
    x_flat = x.astype(jnp.float32).reshape(B * N, in_dim)

    # Host-built block-diagonal adjacency: one (G*N, G*N) block per grid step
    # turns G tiny adj matmuls into a single dense MXU pass.
    adj_g = adj.astype(jnp.float32).reshape(Bg, G, N, N)
    eye_g = jnp.eye(G, dtype=jnp.float32)
    adj_bd = jnp.einsum("bgnm,gh->bgnhm", adj_g, eye_g).reshape(Bg, Nb, Nb)

    # Pack both (zero-padded) weight matrices into a single resident slab.
    w_slab = jnp.zeros((2, LANE, LANE), jnp.float32)
    w_slab = w_slab.at[0, :in_dim, :hid].set(params["w1"])
    w_slab = w_slab.at[1, :hid, :out_dim].set(params["w2"])

    # Resident BN vector slab: g1, be1, g2, be2 (biases dropped — see kernel).
    vecs = jnp.zeros((4, LANE), jnp.float32)
    vecs = vecs.at[0, :hid].set(params["g1"])
    vecs = vecs.at[1, :hid].set(params["be1"])
    vecs = vecs.at[2, :out_dim].set(params["g2"])
    vecs = vecs.at[3, :out_dim].set(params["be2"])

    grid_spec = pltpu.PrefetchScalarGridSpec(
        num_scalar_prefetch=0,
        grid=(Bg,),
        in_specs=[
            pl.BlockSpec((Nb, in_dim), lambda b: (b, 0)),        # packed node slab
            pl.BlockSpec((None, Nb, Nb), lambda b: (b, 0, 0)),   # block-diag adj
            pl.BlockSpec((2, LANE, LANE), lambda b: (0, 0, 0)),  # weights (resident)
            pl.BlockSpec((4, LANE), lambda b: (0, 0)),           # bn vecs (resident)
        ],
        out_specs=pl.BlockSpec((Nb, out_dim), lambda b: (b, 0)),
    )

    out_flat = pl.pallas_call(
        _make_kernel(G, N, in_dim, out_dim),
        out_shape=jax.ShapeDtypeStruct((B * N, out_dim), jnp.float32),
        grid_spec=grid_spec,
        compiler_params=pltpu.CompilerParams(
            dimension_semantics=("parallel",)),  # graph groups shard across TCs
    )(x_flat, adj_bd, w_slab, vecs)

    return out_flat.reshape(B, N, out_dim)


def gcn_reference(x, adj, params):
    def one_graph(xi, ai):
        def bn(h, g, be):
            m = jnp.mean(h, axis=0, keepdims=True)
            v = jnp.mean((h - m) ** 2, axis=0, keepdims=True)
            return (h - m) * lax.rsqrt(v + BN_EPS) * g + be

        h = ai @ (xi @ params["w1"]) + params["b1"]
        h = bn(h, params["g1"], params["be1"])
        h = ai @ (h @ params["w2"]) + params["b2"]
        h = bn(h, params["g2"], params["be2"])
        return jnp.tanh(h)

    return jax.vmap(one_graph)(x, adj)


if __name__ == "__main__":
    # Small shapes consistent with the module: B graphs of N nodes each.
    # B=16, N=16 -> packing G=8 gives 128-row node slabs and a 2-step grid.
    B, N, IN_DIM, HIDDEN_DIM, OUT_DIM = 16, 16, 8, 32, 4

    key = jax.random.PRNGKey(0)
    kx, ka, kw1, kb1, kw2, kb2, kg1, kbe1, kg2, kbe2 = jax.random.split(key, 10)

    x = jax.random.normal(kx, (B, N, IN_DIM), dtype=jnp.float32)

    # Symmetric, self-loop, row-normalized adjacency per graph.
    a = (jax.random.uniform(ka, (B, N, N)) > 0.7).astype(jnp.float32)
    a = jnp.maximum(a, jnp.transpose(a, (0, 2, 1)))
    a = a + jnp.eye(N, dtype=jnp.float32)[None, :, :]
    adj = a / jnp.sum(a, axis=-1, keepdims=True)

    params = {
        "w1": jax.random.normal(kw1, (IN_DIM, HIDDEN_DIM), jnp.float32) * 0.3,
        "b1": jax.random.normal(kb1, (HIDDEN_DIM,), jnp.float32) * 0.1,
        "g1": 1.0 + 0.1 * jax.random.normal(kg1, (HIDDEN_DIM,), jnp.float32),
        "be1": 0.1 * jax.random.normal(kbe1, (HIDDEN_DIM,), jnp.float32),
        "w2": jax.random.normal(kw2, (HIDDEN_DIM, OUT_DIM), jnp.float32) * 0.3,
        "b2": jax.random.normal(kb2, (OUT_DIM,), jnp.float32) * 0.1,
        "g2": 1.0 + 0.1 * jax.random.normal(kg2, (OUT_DIM,), jnp.float32),
        "be2": 0.1 * jax.random.normal(kbe2, (OUT_DIM,), jnp.float32),
    }

    out = jax.block_until_ready(gcn_forward(x, adj, params))
    ref = jax.block_until_ready(gcn_reference(x, adj, params))

    np.testing.assert_allclose(np.asarray(out), np.asarray(ref),
                               rtol=1e-4, atol=1e-4)
    print("KERNEL_OK")
</pallas_src>

<mosaic_0001>
module attributes {stable_mosaic.version = 11 : i64} {
  func.func @gcn_kernel(%arg0: i32, %arg1: memref<128x8xf32, #tpu.memory_space<vmem>>, %arg2: memref<1x128x128xf32, #tpu.memory_space<vmem>>, %arg3: memref<2x128x128xf32, #tpu.memory_space<vmem>>, %arg4: memref<4x128xf32, #tpu.memory_space<vmem>>, %arg5: memref<128x4xf32, #tpu.memory_space<vmem>>) attributes {dimension_semantics = [#tpu.dimension_semantics<parallel>], iteration_bounds = array<i64: 2>, scalar_prefetch = 0 : i64, scratch_operands = 0 : i64, tpu.core_type = #tpu.core_type<tc>, window_params = [{transform_indices = @transform_0, window_bounds = array<i64: 128, 8>}, {transform_indices = @transform_1, window_bounds = array<i64: 1, 128, 128>}, {pipeline_mode = #tpu.pipeline_mode<synchronous>, transform_indices = @transform_2, window_bounds = array<i64: 2, 128, 128>}, {pipeline_mode = #tpu.pipeline_mode<synchronous>, transform_indices = @transform_3, window_bounds = array<i64: 4, 128>}, {transform_indices = @transform_4, window_bounds = array<i64: 128, 4>}]} {
    %c0 = arith.constant 0 : index
    %c0_0 = arith.constant 0 : index
    %0 = vector.load %arg1[%c0, %c0_0] : memref<128x8xf32, #tpu.memory_space<vmem>>, vector<128x8xf32>
    %c0_1 = arith.constant 0 : index
    %c0_2 = arith.constant 0 : index
    %c0_3 = arith.constant 0 : index
    %1 = vector.load %arg2[%c0_1, %c0_2, %c0_3] : memref<1x128x128xf32, #tpu.memory_space<vmem>>, vector<1x128x128xf32>
    %2 = vector.shape_cast %1 : vector<1x128x128xf32> to vector<128x128xf32>
    %c0_4 = arith.constant 0 : index
    %c0_5 = arith.constant 0 : index
    %c0_6 = arith.constant 0 : index
    %3 = vector.load %arg3[%c0_4, %c0_5, %c0_6] : memref<2x128x128xf32, #tpu.memory_space<vmem>>, vector<1x128x128xf32>
    %4 = vector.shape_cast %3 : vector<1x128x128xf32> to vector<128x128xf32>
    %5 = vector.extract_strided_slice %4 {offsets = [0, 0], sizes = [8, 128], strides = [1, 1]} : vector<128x128xf32> to vector<8x128xf32>
    %c1 = arith.constant 1 : index
    %c0_7 = arith.constant 0 : index
    %c0_8 = arith.constant 0 : index
    %6 = vector.load %arg3[%c1, %c0_7, %c0_8] : memref<2x128x128xf32, #tpu.memory_space<vmem>>, vector<1x128x128xf32>
    %7 = vector.shape_cast %6 : vector<1x128x128xf32> to vector<128x128xf32>
    %c0_9 = arith.constant 0 : index
    %c0_10 = arith.constant 0 : index
    %8 = vector.load %arg4[%c0_9, %c0_10] : memref<4x128xf32, #tpu.memory_space<vmem>>, vector<4x128xf32>
    %9 = vector.extract_strided_slice %8 {offsets = [0, 0], sizes = [1, 128], strides = [1, 1]} : vector<4x128xf32> to vector<1x128xf32>
    %10 = vector.extract_strided_slice %8 {offsets = [1, 0], sizes = [1, 128], strides = [1, 1]} : vector<4x128xf32> to vector<1x128xf32>
    %11 = vector.extract_strided_slice %8 {offsets = [2, 0], sizes = [1, 128], strides = [1, 1]} : vector<4x128xf32> to vector<1x128xf32>
    %12 = vector.extract_strided_slice %8 {offsets = [3, 0], sizes = [1, 128], strides = [1, 1]} : vector<4x128xf32> to vector<1x128xf32>
    %13 = tpu.iota {dimensions = array<i32: 0>} : vector<8x128xi32>
    %14 = tpu.iota {dimensions = array<i32: 1>} : vector<8x128xi32>
    %c16_i32 = arith.constant 16 : i32
    %15 = vector.broadcast %c16_i32 : i32 to vector<8x128xi32>
    %16 = arith.muli %13, %15 : vector<8x128xi32>
    %17 = arith.subi %14, %16 : vector<8x128xi32>
    %c0_i32 = arith.constant 0 : i32
    %18 = vector.broadcast %c0_i32 : i32 to vector<8x128xi32>
    %19 = arith.cmpi sge, %17, %18 : vector<8x128xi32>
    %c16_i32_11 = arith.constant 16 : i32
    %20 = vector.broadcast %c16_i32_11 : i32 to vector<8x128xi32>
    %21 = arith.cmpi slt, %17, %20 : vector<8x128xi32>
    %22 = arith.andi %19, %21 : vector<8x128xi1>
    %cst = arith.constant 6.250000e-02 : f32
    %cst_12 = arith.constant 0.000000e+00 : f32
    %23 = vector.broadcast %cst : f32 to vector<8x128xf32>
    %24 = vector.broadcast %cst_12 : f32 to vector<8x128xf32>
    %25 = arith.select %22, %23, %24 : vector<8x128xi1>, vector<8x128xf32>
    %26 = tpu.iota {dimensions = array<i32: 0>} : vector<128x8xi32>
    %27 = tpu.iota {dimensions = array<i32: 1>} : vector<128x8xi32>
    %c16_i32_13 = arith.constant 16 : i32
    %28 = vector.broadcast %c16_i32_13 : i32 to vector<128x8xi32>
    %29 = arith.muli %27, %28 : vector<128x8xi32>
    %30 = arith.subi %26, %29 : vector<128x8xi32>
    %c0_i32_14 = arith.constant 0 : i32
    %31 = vector.broadcast %c0_i32_14 : i32 to vector<128x8xi32>
    %32 = arith.cmpi sge, %30, %31 : vector<128x8xi32>
    %c16_i32_15 = arith.constant 16 : i32
    %33 = vector.broadcast %c16_i32_15 : i32 to vector<128x8xi32>
    %34 = arith.cmpi slt, %30, %33 : vector<128x8xi32>
    %35 = arith.andi %32, %34 : vector<128x8xi1>
    %cst_16 = arith.constant 1.000000e+00 : f32
    %cst_17 = arith.constant 0.000000e+00 : f32
    %36 = vector.broadcast %cst_16 : f32 to vector<128x8xf32>
    %37 = vector.broadcast %cst_17 : f32 to vector<128x8xf32>
    %38 = arith.select %35, %36, %37 : vector<128x8xi1>, vector<128x8xf32>
    %cst_18 = arith.constant dense<0.000000e+00> : vector<128x128xf32>
    %39 = tpu.matmul %0, %5, %cst_18 {dimension_numbers = #tpu.dot_dimension_numbers<[1], [0], [0], [1], [0, 0, 1, 1], [], []>} : vector<128x8xf32>, vector<8x128xf32>, vector<128x128xf32> -> vector<128x128xf32>
    %cst_19 = arith.constant dense<0.000000e+00> : vector<128x128xf32>
    %40 = tpu.matmul %2, %39, %cst_19 {dimension_numbers = #tpu.dot_dimension_numbers<[1], [0], [0], [1], [0, 0, 1, 1], [], []>} : vector<128x128xf32>, vector<128x128xf32>, vector<128x128xf32> -> vector<128x128xf32>
    %cst_20 = arith.constant dense<0.000000e+00> : vector<8x128xf32>
    %41 = tpu.matmul %25, %40, %cst_20 {dimension_numbers = #tpu.dot_dimension_numbers<[1], [0], [0], [1], [0, 0, 1, 1], [], []>} : vector<8x128xf32>, vector<128x128xf32>, vector<8x128xf32> -> vector<8x128xf32>
    %42 = arith.mulf %40, %40 : vector<128x128xf32>
    %cst_21 = arith.constant dense<0.000000e+00> : vector<8x128xf32>
    %43 = tpu.matmul %25, %42, %cst_21 {dimension_numbers = #tpu.dot_dimension_numbers<[1], [0], [0], [1], [0, 0, 1, 1], [], []>} : vector<8x128xf32>, vector<128x128xf32>, vector<8x128xf32> -> vector<8x128xf32>
    %44 = arith.mulf %41, %41 : vector<8x128xf32>
    %45 = arith.subf %43, %44 : vector<8x128xf32>
    %cst_22 = arith.constant 0.000000e+00 : f32
    %46 = vector.broadcast %cst_22 : f32 to vector<8x128xf32>
    %47 = arith.maximumf %45, %46 : vector<8x128xf32>
    %cst_23 = arith.constant 9.99999974E-6 : f32
    %48 = vector.broadcast %cst_23 : f32 to vector<8x128xf32>
    %49 = arith.addf %47, %48 : vector<8x128xf32>
    %50 = math.rsqrt %49 : vector<8x128xf32>
    %cst_24 = arith.constant dense<0.000000e+00> : vector<128x128xf32>
    %51 = tpu.matmul %38, %41, %cst_24 {dimension_numbers = #tpu.dot_dimension_numbers<[1], [0], [0], [1], [0, 0, 1, 1], [], []>} : vector<128x8xf32>, vector<8x128xf32>, vector<128x128xf32> -> vector<128x128xf32>
    %cst_25 = arith.constant dense<0.000000e+00> : vector<128x128xf32>
    %52 = tpu.matmul %38, %50, %cst_25 {dimension_numbers = #tpu.dot_dimension_numbers<[1], [0], [0], [1], [0, 0, 1, 1], [], []>} : vector<128x8xf32>, vector<8x128xf32>, vector<128x128xf32> -> vector<128x128xf32>
    %53 = arith.subf %40, %51 : vector<128x128xf32>
    %54 = arith.mulf %53, %52 : vector<128x128xf32>
    %55 = vector.broadcast %9 : vector<1x128xf32> to vector<128x128xf32>
    %56 = arith.mulf %54, %55 : vector<128x128xf32>
    %57 = vector.broadcast %10 : vector<1x128xf32> to vector<128x128xf32>
    %58 = arith.addf %56, %57 : vector<128x128xf32>
    %cst_26 = arith.constant dense<0.000000e+00> : vector<128x128xf32>
    %59 = tpu.matmul %58, %7, %cst_26 {dimension_numbers = #tpu.dot_dimension_numbers<[1], [0], [0], [1], [0, 0, 1, 1], [], []>} : vector<128x128xf32>, vector<128x128xf32>, vector<128x128xf32> -> vector<128x128xf32>
    %cst_27 = arith.constant dense<0.000000e+00> : vector<128x128xf32>
    %60 = tpu.matmul %2, %59, %cst_27 {dimension_numbers = #tpu.dot_dimension_numbers<[1], [0], [0], [1], [0, 0, 1, 1], [], []>} : vector<128x128xf32>, vector<128x128xf32>, vector<128x128xf32> -> vector<128x128xf32>
    %cst_28 = arith.constant dense<0.000000e+00> : vector<8x128xf32>
    %61 = tpu.matmul %25, %60, %cst_28 {dimension_numbers = #tpu.dot_dimension_numbers<[1], [0], [0], [1], [0, 0, 1, 1], [], []>} : vector<8x128xf32>, vector<128x128xf32>, vector<8x128xf32> -> vector<8x128xf32>
    %62 = arith.mulf %60, %60 : vector<128x128xf32>
    %cst_29 = arith.constant dense<0.000000e+00> : vector<8x128xf32>
    %63 = tpu.matmul %25, %62, %cst_29 {dimension_numbers = #tpu.dot_dimension_numbers<[1], [0], [0], [1], [0, 0, 1, 1], [], []>} : vector<8x128xf32>, vector<128x128xf32>, vector<8x128xf32> -> vector<8x128xf32>
    %64 = arith.mulf %61, %61 : vector<8x128xf32>
    %65 = arith.subf %63, %64 : vector<8x128xf32>
    %cst_30 = arith.constant 0.000000e+00 : f32
    %66 = vector.broadcast %cst_30 : f32 to vector<8x128xf32>
    %67 = arith.maximumf %65, %66 : vector<8x128xf32>
    %cst_31 = arith.constant 9.99999974E-6 : f32
    %68 = vector.broadcast %cst_31 : f32 to vector<8x128xf32>
    %69 = arith.addf %67, %68 : vector<8x128xf32>
    %70 = math.rsqrt %69 : vector<8x128xf32>
    %cst_32 = arith.constant dense<0.000000e+00> : vector<128x128xf32>
    %71 = tpu.matmul %38, %61, %cst_32 {dimension_numbers = #tpu.dot_dimension_numbers<[1], [0], [0], [1], [0, 0, 1, 1], [], []>} : vector<128x8xf32>, vector<8x128xf32>, vector<128x128xf32> -> vector<128x128xf32>
    %cst_33 = arith.constant dense<0.000000e+00> : vector<128x128xf32>
    %72 = tpu.matmul %38, %70, %cst_33 {dimension_numbers = #tpu.dot_dimension_numbers<[1], [0], [0], [1], [0, 0, 1, 1], [], []>} : vector<128x8xf32>, vector<8x128xf32>, vector<128x128xf32> -> vector<128x128xf32>
    %73 = arith.subf %60, %71 : vector<128x128xf32>
    %74 = arith.mulf %73, %72 : vector<128x128xf32>
    %75 = vector.broadcast %11 : vector<1x128xf32> to vector<128x128xf32>
    %76 = arith.mulf %74, %75 : vector<128x128xf32>
    %77 = vector.broadcast %12 : vector<1x128xf32> to vector<128x128xf32>
    %78 = arith.addf %76, %77 : vector<128x128xf32>
    %79 = vector.extract_strided_slice %78 {offsets = [0, 0], sizes = [128, 4], strides = [1, 1]} : vector<128x128xf32> to vector<128x4xf32>
    %80 = math.tanh %79 : vector<128x4xf32>
    %c0_34 = arith.constant 0 : index
    %c0_35 = arith.constant 0 : index
    %81 = vector.load %arg5[%c0_34, %c0_35] : memref<128x4xf32, #tpu.memory_space<vmem>>, vector<128x4xf32>
    tpu.vector_store %arg5[%c0_34, %c0_35], %80 {strides = array<i32>} : memref<128x4xf32, #tpu.memory_space<vmem>>, vector<128x4xf32>,
    return
  }
  func.func @transform_0(%arg0: i32) -> (i32, i32) {
    %c0_i32 = arith.constant 0 : i32
    %c0_i32_0 = arith.constant 0 : i32
    return %arg0, %c0_i32 : i32, i32
  }
  func.func @transform_1(%arg0: i32) -> (i32, i32, i32) {
    %c0_i32 = arith.constant 0 : i32
    %c0_i32_0 = arith.constant 0 : i32
    %c0_i32_1 = arith.constant 0 : i32
    return %arg0, %c0_i32, %c0_i32_0 : i32, i32, i32
  }
  func.func @transform_2(%arg0: i32) -> (i32, i32, i32) {
    %c0_i32 = arith.constant 0 : i32
    %c0_i32_0 = arith.constant 0 : i32
    %c0_i32_1 = arith.constant 0 : i32
    %c0_i32_2 = arith.constant 0 : i32
    return %c0_i32, %c0_i32_0, %c0_i32_1 : i32, i32, i32
  }
  func.func @transform_3(%arg0: i32) -> (i32, i32) {
    %c0_i32 = arith.constant 0 : i32
    %c0_i32_0 = arith.constant 0 : i32
    %c0_i32_1 = arith.constant 0 : i32
    return %c0_i32, %c0_i32_0 : i32, i32
  }
  func.func @transform_4(%arg0: i32) -> (i32, i32) {
    %c0_i32 = arith.constant 0 : i32
    %c0_i32_0 = arith.constant 0 : i32
    return %arg0, %c0_i32 : i32, i32
  }
}

</mosaic_0001>

<bundles_post_ra>
// kernel: tpu_custom_call.1
= control target key start
LH: loop header
LB: loop body
LE: loop exit
PB: predicated region body
PF: predicated region fallthrough
CT: control target
= control target key end

     0   :  { %9 = vsyncpa [#allocation3], 0  ;;  %s3343_s15 = smov 0   ;;  %s4157_s0 = inlined_call_operand.vmem [shape: f32[256,8], index: 0, kind: input, shape index: {}]   ;;  %s4158_s1 = inlined_call_operand.vmem [shape: f32[2,128,128], index: 1, kind: input, shape index: {}]   ;;  %s4159_s2 = inlined_call_operand.hbm [shape: f32[2,128,128], index: 2, kind: input, shape index: {}]   ;;  %s4160_s3 = inlined_call_operand.vmem [shape: f32[4,128], index: 3, kind: input, shape index: {}]   ;;  %s4161_s4 = inlined_call_operand.vmem [shape: f32[256,4], index: 4, kind: output, shape index: {}]  }
   0x1 LB: > { %s3349_s16 = sadd.s32 4294967295, %s3309_s15   ;;  %p2231_p0 = scmp.ge.s32.totalorder %s3309_s15, 1  ;;  %s3309_s15 = sphi %s3343_s15, %s15_s15  }
   0x2   : > { %p140_p1 = scmp.lt.s32.totalorder %s3309_s15, 3  ;;  %s3311_s17 = smov [#allocation2]  }
   0x3   : > { %s152_s18 = sshll.u32 %s3311_s17, 4  ;;  %p4162_p3 = scmp.eq.s32.totalorder %s3349_s16, 0  ;;  %s153_s18 = int_to_ptr.vmem [resolvable:$true] %s152_s18 }
   0x4   : > { %p3353_p2 = pnand %p2231_p0, %p140_p1  ;;  %s3271_s23 = scalar_lea.hbm %s4159_s2, 4096 }
   0x5   : > { %p3272_p6 = scmp.ne.s32.totalorder %s4159_s2, %s3271_s23  ;;  %p3278_p10 = scmp.lt.u32.totalorder %s3271_s23, %s4159_s2 }
   0x6   : > { %s4178_s19 = scalar_select %p3353_p2, 1, 0 }
   0x7   : > { %p3214_p4 = pneg %p3353_p2 }
   0x9   : > { %p3362_p5 = pnand %p4162_p3, %p3214_p4 }
   0xb   : > { %p3273_p7 = pneg %p3362_p5 }
   0xd   : > { %p3274_p8 = pnand %p3273_p7, %p3272_p6 }
   0xf   : > { %p3275_p9 = pneg %p3274_p8 }
  0x11   : > { %p3280_p11 = pnand %p3278_p10, %p3275_p9 }
  0x13   : > { %3283 = shalt.err (!%p3280_p11)
}
  0x14   : > { %s3284_s28 = scalar_lea.vmem %s153_s18, 4096  ;;  %p3292_p1 = scmp.lt.s32.totalorder %s153_s18, %s153_s18 }
  0x15   : > { %p3285_p12 = scmp.ne.s32.totalorder %s153_s18, %s3284_s28  ;;  %p3293_p4 = scmp.lt.s32.totalorder %s3284_s28, %s3284_s28 }
  0x17   : > { %p3287_p13 = pnand %p3285_p12, %p3273_p7  ;;  %p3294_p3 = por %p3293_p4, %p3292_p1 }
  0x19   : > { %p3288_p0 = pneg %p3287_p13 }
  0x1b   : > { %p3295_p2 = pnand %p3294_p3, %p3288_p0 }
  0x1d   : > { %3298 = shalt.err (!%p3295_p2)
}
  0x1e   : > { %s3312_s29 = smov 128   ;;  %s3313_s30 = smov 8  }
  0x1f   : > { %3217 = dma.hbm_to_vmem [thread:$0]  (!%p3362_p5), %s4159_s2, 4096, %s153_s18, [#allocation3], %s3312_s29, %s3312_s29, %s3313_s30  }
  0x20   : > { %p4180_p6 = scmp.ne.s32.totalorder %s4178_s19, 0 }
  0x22   : > { %188 = sbr.rel (%p4180_p6) target bundleno = 1976 (0x7b8), region = 36 }
  0x29   : > { %p4181_p8 = scmp.eq.s32.totalorder %s3349_s16, 0 }
  0x2b   : > { %3304 = dma.done.wait (%p4181_p8), [#allocation3], 4096   ;;  %p4182_p7 = pmov %p4181_p8 }
  0x2c   : > { %s2236_s7 = sshll.u32 %s3349_s16, 4  ;;  %vm393_vm0 = vcmask 64512   ;;  %v268_v0 = vld [vmem:[#allocation2] sm:$0xff]  ;;  %p225_p3 = scmp.lt.s32.totalorder %s3349_s16, 1  ;;  %v4168_v57 = vmov 0.0|0.0   ;;  %vm3315_vm1 = vmmov 0  }
  0x2d   : > { %3306 = vsyncadd (%p4182_p7), [#allocation3], 4294963200  ;;  %p220_p2 = scmp.lt.s32.totalorder %s2236_s7, 31  ;;  %2578 = vmatprep.subr.mxu0 %v268_v0  ;;  %v4166_v58 = vmov 0.0  }
  0x2e   : > { %2579 = vmatpush3.msra.mxu0 %v268_v0  ;;  %s4203_s16 = smov (!%p225_p3, %s3349_s16), 1 }
  0x2f   : > { %s4201_s7 = smov (!%p220_p2, %s2236_s7), 31  ;;  %s2328_s12 = sshll.u32 %s4203_s16, 7  ;;  %3048 = vmatprep.subr.bf16.mxu0 %v4168_v57 }
  0x30   : > { %s2237_s8 = sshll.u32 %s4201_s7, 3  ;;  %s3436_s17 = scalar_lea.vmem %s4158_s1, %s2328_s12 }
  0x31   : > { %s3397_s11 = scalar_lea.vmem %s4157_s0, %s2237_s8  ;;  %v3439_v17 = vld [vmem:[%s3436_s17] sm:$0xff]  ;;  %v3443_v42 = vld [vmem:[%s3436_s17 + $0x8] sm:$0xff]  ;;  %v3446_v43 = vld [vmem:[%s3436_s17 + $0x10] sm:$0xff]  ;;  %s4085_s21 = scalar_lea.vmem %s4161_s4, %s2237_s8 }
  0x32   : > { %v236_v1 = vld [vmem:[%s3397_s11] sm:$0xff]  ;;  %v237_v2 = vld [vmem:[%s3397_s11 + $0x8] sm:$0xff]  ;;  %v238_v3 = vld [vmem:[%s3397_s11 + $0x10] sm:$0xff]  ;;  %2636 = vmatprep.mubr.f32.mxu1 %v3439_v17 }
  0x33   : > { %2580 = vmatprep.mubr.msk.f32.mxu0 %vm393_vm0, %v236_v1  ;;  %v239_v4 = vld [vmem:[%s3397_s11 + $0x18] sm:$0xff]  ;;  %v240_v5 = vld [vmem:[%s3397_s11 + $0x20] sm:$0xff]  ;;  %v241_v6 = vld [vmem:[%s3397_s11 + $0x28] sm:$0xff] }
  0x34   : > { %2581 = vmatmul.mubr.msk.f32.vlgmr.msra.gmra.mrb[0].mxu0 %vm393_vm0, %v237_v2  ;;  %v242_v7 = vld [vmem:[%s3397_s11 + $0x30] sm:$0xff]  ;;  %v243_v8 = vld [vmem:[%s3397_s11 + $0x38] sm:$0xff]  ;;  %v244_v9 = vld [vmem:[%s3397_s11 + $0x40] sm:$0xff] }
  0x35   : > { %2583 = vmatprep.mubr.msk.f32.mxu0 %vm393_vm0, %v238_v3  ;;  %v245_v10 = vld [vmem:[%s3397_s11 + $0x48] sm:$0xff]  ;;  %v246_v11 = vld [vmem:[%s3397_s11 + $0x50] sm:$0xff]  ;;  %v247_v12 = vld [vmem:[%s3397_s11 + $0x58] sm:$0xff] }
  0x36   : > { %v248_v13 = vld [vmem:[%s3397_s11 + $0x60] sm:$0xff]  ;;  %v249_v14 = vld [vmem:[%s3397_s11 + $0x68] sm:$0xff]  ;;  %v250_v15 = vld [vmem:[%s3397_s11 + $0x70] sm:$0xff] }
  0x37   : > { %v251_v16 = vld [vmem:[%s3397_s11 + $0x78] sm:$0xff]  ;;  %v3454_v45 = vld [vmem:[%s3436_s17 + $0x20] sm:$0xff]  ;;  %v3459_v46 = vld [vmem:[%s3436_s17 + $0x28] sm:$0xff] }
  0x38   : > { %2584 = vmatmul.mubr.msk.f32.gmra.mrb[2].mxu0 %vm393_vm0, %v239_v4  ;;  %v3451_v44 = vld [vmem:[%s3436_s17 + $0x18] sm:$0xff]  ;;  %v3462_v47 = vld [vmem:[%s3436_s17 + $0x30] sm:$0xff]  ;;  %v3470_v49 = vld [vmem:[%s3436_s17 + $0x40] sm:$0xff] }
  0x39   : > { %2586 = vmatprep.mubr.msk.f32.mxu0 %vm393_vm0, %v240_v5  ;;  %v3467_v48 = vld [vmem:[%s3436_s17 + $0x38] sm:$0xff]  ;;  %v3475_v50 = vld [vmem:[%s3436_s17 + $0x48] sm:$0xff]  ;;  %v3478_v51 = vld [vmem:[%s3436_s17 + $0x50] sm:$0xff] }
  0x3a   : > { %v3483_v52 = vld [vmem:[%s3436_s17 + $0x58] sm:$0xff]  ;;  %v3486_v53 = vld [vmem:[%s3436_s17 + $0x60] sm:$0xff]  ;;  %v3491_v54 = vld [vmem:[%s3436_s17 + $0x68] sm:$0xff] }
  0x3b   : > { %v3494_v55 = vld [vmem:[%s3436_s17 + $0x70] sm:$0xff]  ;;  %v3499_v56 = vld [vmem:[%s3436_s17 + $0x78] sm:$0xff] }
  0x3c   : > { %2587 = vmatmul.mubr.msk.f32.gmra.mrb[4].mxu0 %vm393_vm0, %v241_v6 }
  0x3d   : > { %2589 = vmatprep.mubr.msk.f32.mxu0 %vm393_vm0, %v242_v7 }
  0x40   : > { %2590 = vmatmul.mubr.msk.f32.gmra.mrb[6].mxu0 %vm393_vm0, %v243_v8 }
  0x41   : > { %2592 = vmatprep.mubr.msk.f32.mxu0 %vm393_vm0, %v244_v9 }
  0x44   : > { %2593 = vmatmul.mubr.msk.f32.gmra.mrb[8].mxu0 %vm393_vm0, %v245_v10 }
  0x45   : > { %2595 = vmatprep.mubr.msk.f32.mxu0 %vm393_vm0, %v246_v11 }
  0x48   : > { %2596 = vmatmul.mubr.msk.f32.gmra.mrb[10].mxu0 %vm393_vm0, %v247_v12 }
  0x49   : > { %2598 = vmatprep.mubr.msk.f32.mxu0 %vm393_vm0, %v248_v13 }
  0x4c   : > { %2599 = vmatmul.mubr.msk.f32.gmra.mrb[12].mxu0 %vm393_vm0, %v249_v14 }
  0x4d   : > { %2601 = vmatprep.mubr.msk.f32.mxu0 %vm393_vm0, %v250_v15 }
  0x50   : > { %2602 = vmatmul.mubr.msk.f32.gmra.mrb[14].mxu0 %vm393_vm0, %v251_v16  ;;  %v287_v16 = vlaneseq }
  0x51   : > { %2692 = vmatprep.mubr.msk.f32.mxu0 %vm3315_vm1, %v4166_v58 }
 0x107   : > { %v2582_v18 = vpop.f32.mrb[0].mxu0 }
 0x108   : > { %v508_v19 = vpop.f32.mrb[1].mxu0 }
 0x109   : > { %v3016_v20 = vpack.c.bf16 %v2582_v18, %v508_v19 }
 0x10b   : > { %v2585_v21 = vpop.f32.mrb[2].mxu0  ;;  %3017 = vmatprep.subr.bf16.mxu1 %v3016_v20 }
 0x10c   : > { %v518_v22 = vpop.f32.mrb[3].mxu0  ;;  %3019 = vmatpush3.bf16.msra.mxu1 %v3016_v20 }
 0x10d   : > { %v3020_v23 = vpack.c.bf16 %v2585_v21, %v518_v22 }
 0x10f   : > { %v2588_v24 = vpop.f32.mrb[4].mxu0  ;;  %3021 = vmatprep.subr.bf16.mxu1 %v3020_v23 }
 0x110   : > { %v528_v25 = vpop.f32.mrb[5].mxu0  ;;  %3023 = vmatpush3.bf16.msra.mxu1 %v3020_v23 }
 0x111   : > { %v3024_v26 = vpack.c.bf16 %v2588_v24, %v528_v25  ;;  %v3561_v24 = vshrl.u32 %v287_v16, 7 }
 0x113   : > { %v2591_v27 = vpop.f32.mrb[6].mxu0  ;;  %3025 = vmatprep.subr.bf16.mxu1 %v3024_v26  ;;  %4183 = vst [vmem:[#allocation5_spill] sm:$0xff] %v3561_v24 }
 0x114   : > { %v538_v28 = vpop.f32.mrb[7].mxu0  ;;  %3027 = vmatpush3.bf16.msra.mxu1 %v3024_v26 }
 0x115   : > { %v3028_v29 = vpack.c.bf16 %v2591_v27, %v538_v28 }
 0x117   : > { %v2594_v30 = vpop.f32.mrb[8].mxu0  ;;  %3029 = vmatprep.subr.bf16.mxu1 %v3028_v29 }
 0x118   : > { %v548_v31 = vpop.f32.mrb[9].mxu0  ;;  %3031 = vmatpush3.bf16.msra.mxu1 %v3028_v29 }
 0x119   : > { %v3032_v32 = vpack.c.bf16 %v2594_v30, %v548_v31  ;;  %v290_v31 = vand.u32 127, %v287_v16  ;;  %v298_v16 = vadd.s32 16, %v3561_v24 }
 0x11b   : > { %v2597_v33 = vpop.f32.mrb[10].mxu0  ;;  %3033 = vmatprep.subr.bf16.mxu1 %v3032_v32 }
 0x11c   : > { %v558_v34 = vpop.f32.mrb[11].mxu0  ;;  %3035 = vmatpush3.bf16.msra.mxu1 %v3032_v32  ;;  %v291_v32 = vmul.u32 16, %v3561_v24 }
 0x11d   : > { %v3036_v35 = vpack.c.bf16 %v2597_v33, %v558_v34 }
 0x11f   : > { %v2600_v36 = vpop.f32.mrb[12].mxu0  ;;  %3037 = vmatprep.subr.bf16.mxu1 %v3036_v35 }
 0x120   : > { %v568_v37 = vpop.f32.mrb[13].mxu0  ;;  %3039 = vmatpush3.bf16.msra.mxu1 %v3036_v35 }
 0x121   : > { %v3040_v38 = vpack.c.bf16 %v2600_v36, %v568_v37 }
 0x123   : > { %v2603_v39 = vpop.f32.mrb[14].mxu0  ;;  %3041 = vmatprep.subr.bf16.mxu1 %v3040_v38 }
 0x124   : > { %v578_v40 = vpop.f32.mrb[15].mxu0  ;;  %3043 = vmatpush3.bf16.msra.mxu1 %v3040_v38 }
 0x125   : > { %v3044_v41 = vpack.c.bf16 %v2603_v39, %v578_v40  ;;  %v292_v39 = vsub.s32 %v290_v31, %v291_v32  ;;  %v271_v32 = vld [vmem:[#allocation2 + $0x88] sm:$0xff] }
 0x127   : > { %3045 = vmatprep.subr.bf16.mxu1 %v3044_v41  ;;  %vm293_vm2 = vcmp.ge.s32.totalorder %v292_v39, 0  ;;  %vm294_vm3 = vcmp.lt.s32.totalorder %v292_v39, 16 }
 0x128   : > { %3047 = vmatpush3.bf16.msra.mxu1 %v3044_v41  ;;  %vm3605_vm4 = vmand %vm293_vm2, %vm294_vm3 }
 0x129   : > { %3072 = vmatprep.subr.bf16.mxu1 %v4168_v57 }
 0x12b   : > { %2637 = vmatmul.mubr.f32.vlgmr.msra.gmra.mrb[0].mxu1 %v3443_v42 }
 0x12c   : > { %2639 = vmatprep.mubr.f32.mxu1 %v3446_v43 }
 0x12f   : > { %2640 = vmatmul.mubr.f32.gmra.mrb[2].mxu1 %v3451_v44 }
 0x130   : > { %2642 = vmatprep.mubr.f32.mxu1 %v3454_v45 }
 0x133   : > { %2643 = vmatmul.mubr.f32.gmra.mrb[4].mxu1 %v3459_v46 }
 0x134   : > { %2645 = vmatprep.mubr.f32.mxu1 %v3462_v47 }
 0x137   : > { %2646 = vmatmul.mubr.f32.gmra.mrb[6].mxu1 %v3467_v48 }
 0x138   : > { %2648 = vmatprep.mubr.f32.mxu1 %v3470_v49 }
 0x13b   : > { %2649 = vmatmul.mubr.f32.gmra.mrb[8].mxu1 %v3475_v50 }
 0x13c   : > { %2651 = vmatprep.mubr.f32.mxu1 %v3478_v51 }
 0x13f   : > { %2652 = vmatmul.mubr.f32.gmra.mrb[10].mxu1 %v3483_v52 }
 0x140   : > { %2654 = vmatprep.mubr.f32.mxu1 %v3486_v53 }
 0x143   : > { %2655 = vmatmul.mubr.f32.gmra.mrb[12].mxu1 %v3491_v54 }
 0x144   : > { %2657 = vmatprep.mubr.f32.mxu1 %v3494_v55 }
 0x147   : > { %2658 = vmatmul.mubr.f32.gmra.mrb[14].mxu1 %v3499_v56 }
 0x148   : > { %2727 = vmatprep.mubr.msk.f32.mxu1 %vm3315_vm1, %v4166_v58 }
 0x1fe   : > { %v3508_v59 = vpop.f32.mrb[0].mxu1 }
 0x1ff   : > { %v803_v60 = vmul.f32 %v3508_v59, %v3508_v59  ;;  %v3512_v61 = vpop.f32.mrb[1].mxu1 }
 0x200   : > { %v3049_v62 = vpack.c.bf16 %v3508_v59, %v3512_v61  ;;  %v802_v63 = vmul.f32 %v3512_v61, %v3512_v61 }
 0x202   : > { %v3073_v0 = vpack.c.bf16 %v803_v60, %v802_v63  ;;  %v3518_v1 = vpop.f32.mrb[2].mxu1  ;;  %3050 = vmatpush3.bf16.msra.mxu0 %v3049_v62 }
 0x203   : > { %v805_v2 = vmul.f32 %v3518_v1, %v3518_v1  ;;  %v3522_v3 = vpop.f32.mrb[3].mxu1  ;;  %3051 = vmatprep.subr.bf16.mxu0 %v4168_v57 }
 0x204   : > { %v3052_v4 = vpack.c.bf16 %v3518_v1, %v3522_v3  ;;  %v804_v5 = vmul.f32 %v3522_v3, %v3522_v3  ;;  %3074 = vmatpush3.bf16.msra.mxu1 %v3073_v0 }
 0x205   : > { %3075 = vmatprep.subr.bf16.mxu1 %v4168_v57 }
 0x206   : > { %v3076_v6 = vpack.c.bf16 %v805_v2, %v804_v5  ;;  %v3530_v7 = vpop.f32.mrb[4].mxu1  ;;  %3053 = vmatpush3.bf16.msra.mxu0 %v3052_v4 }
 0x207   : > { %v807_v8 = vmul.f32 %v3530_v7, %v3530_v7  ;;  %v3534_v9 = vpop.f32.mrb[5].mxu1  ;;  %3054 = vmatprep.subr.bf16.mxu0 %v4168_v57 }
 0x208   : > { %v3055_v10 = vpack.c.bf16 %v3530_v7, %v3534_v9  ;;  %v806_v11 = vmul.f32 %v3534_v9, %v3534_v9  ;;  %3077 = vmatpush3.bf16.msra.mxu1 %v3076_v6 }
 0x209   : > { %3078 = vmatprep.subr.bf16.mxu1 %v4168_v57 }
 0x20a   : > { %v3079_v12 = vpack.c.bf16 %v807_v8, %v806_v11  ;;  %v3542_v13 = vpop.f32.mrb[6].mxu1  ;;  %3056 = vmatpush3.bf16.msra.mxu0 %v3055_v10  ;;  %v4164_v8 = vmov 0.0625   ;;  %v3615_v10 = vmul.u32 16, %v290_v31  ;;  %v270_v31 = vld [vmem:[#allocation2 + $0x80] sm:$0xff] }
 0x20b   : > { %v809_v14 = vmul.f32 %v3542_v13, %v3542_v13  ;;  %v3546_v15 = vpop.f32.mrb[7].mxu1  ;;  %3057 = vmatprep.subr.bf16.mxu0 %v4168_v57  ;;  %v3096_v39 = vpack.c.bf16 %v271_v32, %v270_v31  ;;  %v307_v31 = vadd.s32 88, %v3561_v24 }
 0x20c   : > { %v3058_v18 = vpack.c.bf16 %v3542_v13, %v3546_v15  ;;  %v808_v19 = vmul.f32 %v3546_v15, %v3546_v15  ;;  %3080 = vmatpush3.bf16.msra.mxu1 %v3079_v12  ;;  %v313_v11 = vsub.s32 %v3561_v24, %v3615_v10 }
 0x20d   : > { %3081 = vmatprep.subr.bf16.mxu1 %v4168_v57 }
 0x20e   : > { %v3082_v20 = vpack.c.bf16 %v809_v14, %v808_v19  ;;  %v3554_v21 = vpop.f32.mrb[8].mxu1  ;;  %3059 = vmatpush3.bf16.msra.mxu0 %v3058_v18  ;;  %vm329_vm5 = vcmp.ge.s32.totalorder %v313_v11, 0  ;;  %vm345_vm6 = vcmp.lt.s32.totalorder %v313_v11, 16  ;;  %v297_v14 = vadd.s32 8, %v3561_v24 }
 0x20f   : > { %v811_v22 = vmul.f32 %v3554_v21, %v3554_v21  ;;  %v3558_v23 = vpop.f32.mrb[9].mxu1  ;;  %3060 = vmatprep.subr.bf16.mxu0 %v4168_v57  ;;  %vm361_vm7 = vmand %vm329_vm5, %vm345_vm6  ;;  %v299_v19 = vadd.s32 24, %v3561_v24 }
 0x210   : > { %v3061_v25 = vpack.c.bf16 %v3554_v21, %v3558_v23  ;;  %v810_v26 = vmul.f32 %v3558_v23, %v3558_v23  ;;  %3083 = vmatpush3.bf16.msra.mxu1 %v3082_v20  ;;  %v3620_v12 = vsel %vm361_vm7, 1.0, %v4166_v58  ;;  %v314_v18 = vsub.s32 %v297_v14, %v3615_v10 }
 0x211   : > { %3084 = vmatprep.subr.bf16.mxu1 %v4168_v57  ;;  %v315_v20 = vsub.s32 %v298_v16, %v3615_v10  ;;  %v311_v14 = vadd.s32 120, %v3561_v24 }
 0x212   : > { %v3085_v27 = vpack.c.bf16 %v811_v22, %v810_v26  ;;  %v3568_v28 = vpop.f32.mrb[10].mxu1  ;;  %3062 = vmatpush3.bf16.msra.mxu0 %v3061_v25  ;;  %v300_v22 = vadd.s32 32, %v3561_v24  ;;  %vm330_vm8 = vcmp.ge.s32.totalorder %v314_v18, 0  ;;  %vm346_vm9 = vcmp.lt.s32.totalorder %v314_v18, 16 }
 0x213   : > { %v813_v29 = vmul.f32 %v3568_v28, %v3568_v28  ;;  %v3572_v30 = vpop.f32.mrb[11].mxu1  ;;  %3063 = vmatprep.subr.bf16.mxu0 %v4168_v57  ;;  %v316_v25 = vsub.s32 %v299_v19, %v3615_v10  ;;  %v301_v26 = vadd.s32 40, %v3561_v24  ;;  %vm331_vm10 = vcmp.ge.s32.totalorder %v315_v20, 0  ;;  %vm362_vm12 = vmand %vm330_vm8, %vm346_vm9 }
 0x214   : > { %v3064_v33 = vpack.c.bf16 %v3568_v28, %v3572_v30  ;;  %v812_v34 = vmul.f32 %v3572_v30, %v3572_v30  ;;  %3086 = vmatpush3.bf16.msra.mxu1 %v3085_v27  ;;  %vm347_vm11 = vcmp.lt.s32.totalorder %v315_v20, 16  ;;  %v317_v27 = vsub.s32 %v300_v22, %v3615_v10 }
 0x215   : > { %3087 = vmatprep.subr.bf16.mxu1 %v4168_v57  ;;  %vm363_vm13 = vmand %vm331_vm10, %vm347_vm11  ;;  %vm332_vm14 = vcmp.ge.s32.totalorder %v316_v25, 0  ;;  %vm348_vm15 = vcmp.lt.s32.totalorder %v316_v25, 16  ;;  %v305_v18 = vadd.s32 72, %v3561_v24  ;;  %v306_v22 = vadd.s32 80, %v3561_v24 }
 0x216   : > { %v3088_v35 = vpack.c.bf16 %v813_v29, %v812_v34  ;;  %v3581_v36 = vpop.f32.mrb[12].mxu1  ;;  %3065 = vmatpush3.bf16.msra.mxu0 %v3064_v33  ;;  %v302_v29 = vadd.s32 48, %v3561_v24  ;;  %v303_v33 = vadd.s32 56, %v3561_v24  ;;  %v318_v34 = vsub.s32 %v301_v26, %v3615_v10  ;;  %vm3646_vm5 = vmand %vm332_vm14, %vm348_vm15 }
 0x217   : > { %v815_v37 = vmul.f32 %v3581_v36, %v3581_v36  ;;  %v3585_v38 = vpop.f32.mrb[13].mxu1  ;;  %3066 = vmatprep.subr.bf16.mxu0 %v4168_v57  ;;  %vm333_vm2 = vcmp.ge.s32.totalorder %v317_v27, 0  ;;  %vm349_vm3 = vcmp.lt.s32.totalorder %v317_v27, 16  ;;  %v3665_v25 = vsel %vm3646_vm5, 1.0, %v4166_v58 }
 0x218   : > { %v3067_v40 = vpack.c.bf16 %v3581_v36, %v3585_v38  ;;  %v814_v41 = vmul.f32 %v3585_v38, %v3585_v38  ;;  %3089 = vmatpush3.bf16.msra.mxu1 %v3088_v35  ;;  %v304_v35 = vadd.s32 64, %v3561_v24  ;;  %vm3651_vm6 = vmand %vm333_vm2, %vm349_vm3  ;;  %vm334_vm7 = vcmp.ge.s32.totalorder %v318_v34, 0 }
 0x219   : > { %3090 = vmatprep.subr.bf16.mxu1 %v4168_v57  ;;  %vm350_vm8 = vcmp.lt.s32.totalorder %v318_v34, 16  ;;  %v3670_v27 = vsel %vm3651_vm6, 1.0, %v4166_v58 }
 0x21a   : > { %v3091_v60 = vpack.c.bf16 %v815_v37, %v814_v41  ;;  %v3593_v62 = vpop.f32.mrb[14].mxu1  ;;  %3068 = vmatpush3.bf16.msra.mxu0 %v3067_v40  ;;  %v319_v37 = vsub.s32 %v302_v29, %v3615_v10  ;;  %v3641_v41 = vsel %vm362_vm12, 1.0, %v4166_v58  ;;  %v321_v16 = vsub.s32 %v304_v35, %v3615_v10  ;;  %vm366_vm11 = vmand %vm334_vm7, %vm350_vm8 }
 0x21b   : > { %v817_v63 = vmul.f32 %v3593_v62, %v3593_v62  ;;  %v3597_v0 = vpop.f32.mrb[15].mxu1  ;;  %3069 = vmatprep.subr.bf16.mxu0 %v4168_v57  ;;  %v322_v29 = vsub.s32 %v305_v18, %v3615_v10  ;;  %v308_v35 = vadd.s32 96, %v3561_v24  ;;  %v3683_v34 = vsel %vm366_vm11, 1.0, %v4166_v58 }
 0x21c   : > { %v3070_v2 = vpack.c.bf16 %v3593_v62, %v3597_v0  ;;  %v816_v4 = vmul.f32 %v3597_v0, %v3597_v0  ;;  %3092 = vmatpush3.bf16.msra.mxu1 %v3091_v60  ;;  %vm335_vm9 = vcmp.ge.s32.totalorder %v319_v37, 0  ;;  %vm351_vm10 = vcmp.lt.s32.totalorder %v319_v37, 16 }
 0x21d   : > { %3093 = vmatprep.subr.bf16.mxu1 %v4168_v57  ;;  %vm337_vm15 = vcmp.ge.s32.totalorder %v321_v16, 0  ;;  %vm353_vm2 = vcmp.lt.s32.totalorder %v321_v16, 16  ;;  %vm338_vm6 = vcmp.ge.s32.totalorder %v322_v29, 0  ;;  %vm354_vm7 = vcmp.lt.s32.totalorder %v322_v29, 16 }
 0x21e   : > { %v3094_v5 = vpack.c.bf16 %v817_v63, %v816_v4  ;;  %3071 = vmatpush3.bf16.msra.mxu0 %v3070_v2  ;;  %v3644_v2 = vsel %vm363_vm13, 1.0, %v4166_v58  ;;  %vm367_vm13 = vmand %vm335_vm9, %vm351_vm10 }
 0x21f   : > { %v3686_v37 = vsel %vm367_vm13, 1.0, %v4166_v58  ;;  %vm369_vm5 = vmand %vm337_vm15, %vm353_vm2 }
 0x220   : > { %3095 = vmatpush3.bf16.msra.mxu1 %v3094_v5  ;;  %v320_v5 = vsub.s32 %v303_v33, %v3615_v10  ;;  %v323_v33 = vsub.s32 %v306_v22, %v3615_v10  ;;  %vm370_vm10 = vmand %vm338_vm6, %vm354_vm7 }
 0x221   : > { %2693 = vmatmul.mubr.msk.f32.vlgmr.msra.gmra.mrb[16].mxu0 %vm3605_vm4, %v4164_v8  ;;  %v3711_v18 = vsel %vm370_vm10, 1.0, %v4166_v58 }
 0x222   : > { %2732 = vmatprep.mubr.msk.f32.mxu0 %vm393_vm0, %v3620_v12  ;;  %vm336_vm12 = vcmp.ge.s32.totalorder %v320_v5, 0  ;;  %vm352_vm14 = vcmp.lt.s32.totalorder %v320_v5, 16  ;;  %vm339_vm8 = vcmp.ge.s32.totalorder %v323_v33, 0  ;;  %vm355_vm9 = vcmp.lt.s32.totalorder %v323_v33, 16  ;;  %v272_v33 = vld [vmem:[#allocation2 + $0x90] sm:$0xff] }
 0x223   : > { %2728 = vmatmul.mubr.msk.f32.vlgmr.msra.gmra.mrb[16].mxu1 %vm3605_vm4, %v4164_v8  ;;  %vm368_vm3 = vmand %vm336_vm12, %vm352_vm14  ;;  %v3701_v5 = vsel %vm369_vm5, 1.0, %v4166_v58 }
 0x224   : > { %2758 = vmatprep.mubr.msk.f32.mxu1 %vm393_vm0, %v3620_v12  ;;  %v3698_v4 = vsel %vm368_vm3, 1.0, %v4166_v58  ;;  %vm371_vm11 = vmand %vm339_vm8, %vm355_vm9 }
 0x2f4   : > { %v798_v40 = vpop.f32.mrb[16].mxu0 }
 0x2f5   : > { %v2694_v60 = vpop.f32.mrb[17].mxu0  ;;  %2730 = vmatprep.subr.mxu0 %v798_v40  ;;  %v888_v63 = vmul.f32 %v798_v40, %v798_v40 }
 0x2f6   : > { %v884_v11 = vpop.f32.mrb[16].mxu1  ;;  %2731 = vmatpush3.msra.mxu0 %v798_v40  ;;  %v309_v40 = vadd.s32 104, %v3561_v24  ;;  %v325_v60 = vsub.s32 %v308_v35, %v3615_v10  ;;  %v273_v35 = vld [vmem:[#allocation2 + $0x98] sm:$0xff] }
 0x2f7   : > { %v889_v19 = vsub.f32 %v884_v11, %v888_v63  ;;  %v2729_v20 = vpop.f32.mrb[17].mxu1  ;;  %2733 = vmatmul.mubr.msk.f32.vlgmr.msra.gmra.mrb[18].mxu0 %vm393_vm0, %v3641_v41  ;;  %3097 = vmatprep.subr.bf16.mxu0 %v3096_v39  ;;  %v310_v63 = vadd.s32 112, %v3561_v24 }
 0x2f8   : > { %2735 = vmatprep.mubr.msk.f32.mxu0 %vm393_vm0, %v3644_v2  ;;  %3099 = vmatpush3.bf16.msra.mxu0 %v3096_v39  ;;  %v324_v39 = vsub.s32 %v307_v31, %v3615_v10  ;;  %v326_v11 = vsub.s32 %v309_v40, %v3615_v10  ;;  %vm341_vm14 = vcmp.ge.s32.totalorder %v325_v60, 0  ;;  %vm357_vm15 = vcmp.lt.s32.totalorder %v325_v60, 16  ;;  %v274_v40 = vld [vmem:[#allocation2 + $0xa0] sm:$0xff]  ;;  %v275_v60 = vld [vmem:[#allocation2 + $0xa8] sm:$0xff] }
 0x2f9   : > { %v890_v26 = vmax.f32 %v889_v19, 0.0  ;;  %v327_v16 = vsub.s32 %v310_v63, %v3615_v10  ;;  %v3714_v19 = vsel %vm371_vm11, 1.0, %v4166_v58  ;;  %vm373_vm3 = vmand %vm341_vm14, %vm357_vm15  ;;  %v328_v20 = vsub.s32 %v311_v14, %v3615_v10  ;;  %v277_v14 = vld [vmem:[#allocation2 + $0xb8] sm:$0xff] }
 0x2fa   : > { %vm340_vm12 = vcmp.ge.s32.totalorder %v324_v39, 0  ;;  %vm356_vm13 = vcmp.lt.s32.totalorder %v324_v39, 16  ;;  %vm342_vm5 = vcmp.ge.s32.totalorder %v326_v11, 0  ;;  %vm358_vm6 = vcmp.lt.s32.totalorder %v326_v11, 16  ;;  %v276_v11 = vld [vmem:[#allocation2 + $0xb0] sm:$0xff] }
 0x2fb   : > { %v891_v32 = vadd.f32 1e-05, %v890_v26  ;;  %2736 = vmatmul.mubr.msk.f32.gmra.mrb[20].mxu0 %vm393_vm0, %v3665_v25  ;;  %vm372_vm2 = vmand %vm340_vm12, %vm356_vm13  ;;  %vm343_vm7 = vcmp.ge.s32.totalorder %v327_v16, 0  ;;  %vm359_vm8 = vcmp.lt.s32.totalorder %v327_v16, 16  ;;  %v3725_v29 = vsel %vm373_vm3, 1.0, %v4166_v58 }
 0x2fc   : > { %2738 = vmatprep.mubr.msk.f32.mxu0 %vm393_vm0, %v3670_v27  ;;  %v3722_v26 = vsel %vm372_vm2, 1.0, %v4166_v58  ;;  %vm374_vm9 = vmand %vm342_vm5, %vm358_vm6  ;;  %vm344_vm11 = vcmp.ge.s32.totalorder %v328_v20, 0  ;;  %vm360_vm12 = vcmp.lt.s32.totalorder %v328_v20, 16  ;;  %v3100_v39 = vpack.c.bf16 %v273_v35, %v272_v33  ;;  %v278_v20 = vld [vmem:[#allocation2 + $0xc0] sm:$0xff] }
 0x2fd   : > { %3235 = vrsqrt.f32 %v891_v32  ;;  %vm375_vm10 = vmand %vm343_vm7, %vm359_vm8  ;;  %v3736_v10 = vsel %vm374_vm9, 1.0, %v4166_v58  ;;  %v3104_v63 = vpack.c.bf16 %v275_v60, %v274_v40  ;;  %v3108_v16 = vpack.c.bf16 %v277_v14, %v276_v11  ;;  %v282_v35 = vld [vmem:[#allocation2 + $0xe0] sm:$0xff]  ;;  %v284_v60 = vld [vmem:[#allocation2 + $0xf0] sm:$0xff] }
 0x2fe   : > { %4190 = vst [vmem:[#allocation6_spill] sm:$0xff] %v3736_v10  ;;  %v3739_v31 = vsel %vm375_vm10, 1.0, %v4166_v58  ;;  %vm376_vm13 = vmand %vm344_vm11, %vm360_vm12  ;;  %3101 = vmatprep.subr.bf16.mxu0 %v3100_v39 }
 0x2ff   : > { %2739 = vmatmul.mubr.msk.f32.gmra.mrb[22].mxu0 %vm393_vm0, %v3683_v34  ;;  %4191 = vst [vmem:[#allocation7_spill] sm:$0xff] %v3739_v31  ;;  %v3750_v32 = vsel %vm376_vm13, 1.0, %v4166_v58  ;;  %v281_v58 = vld [vmem:[#allocation2 + $0xd8] sm:$0xff] }
 0x300   : > { %2741 = vmatprep.mubr.msk.f32.mxu0 %vm393_vm0, %v3686_v37  ;;  %4192 = vst [vmem:[#allocation8_spill] sm:$0xff] %v3750_v32  ;;  %3103 = vmatpush3.bf16.msra.mxu0 %v3100_v39  ;;  %v283_v39 = vld [vmem:[#allocation2 + $0xe8] sm:$0xff] }
 0x301   : > { %3105 = vmatprep.subr.bf16.mxu0 %v3104_v63  ;;  %v3120_v40 = vpack.c.bf16 %v283_v39, %v282_v35 }
 0x303   : > { %2742 = vmatmul.mubr.msk.f32.gmra.mrb[24].mxu0 %vm393_vm0, %v3698_v4 }
 0x304   : > { %2744 = vmatprep.mubr.msk.f32.mxu0 %vm393_vm0, %v3701_v5  ;;  %3107 = vmatpush3.bf16.msra.mxu0 %v3104_v63  ;;  %v285_v63 = vld [vmem:[#allocation2 + $0xf8] sm:$0xff] }
 0x305   : > { %3109 = vmatprep.subr.bf16.mxu0 %v3108_v16  ;;  %v3124_v11 = vpack.c.bf16 %v285_v63, %v284_v60 }
 0x307   : > { %v3236_v22 = vpop.eup %3235  ;;  %2745 = vmatmul.mubr.msk.f32.gmra.mrb[26].mxu0 %vm393_vm0, %v3711_v18 }
 0x308   : > { %2756 = vmatprep.subr.mxu1 %v3236_v22  ;;  %2747 = vmatprep.mubr.msk.f32.mxu0 %vm393_vm0, %v3714_v19 }
 0x309   : > { %2757 = vmatpush3.msra.mxu1 %v3236_v22  ;;  %3111 = vmatpush3.bf16.msra.mxu0 %v3108_v16  ;;  %v279_v22 = vld [vmem:[#allocation2 + $0xc8] sm:$0xff] }
 0x30a   : > { %2759 = vmatmul.mubr.msk.f32.vlgmr.msra.gmra.mrb[18].mxu1 %vm393_vm0, %v3641_v41  ;;  %v3112_v8 = vpack.c.bf16 %v279_v22, %v278_v20 }
 0x30b   : > { %2748 = vmatmul.mubr.msk.f32.gmra.mrb[28].mxu0 %vm393_vm0, %v3722_v26  ;;  %2761 = vmatprep.mubr.msk.f32.mxu1 %vm393_vm0, %v3644_v2 }
 0x30c   : > { %2750 = vmatprep.mubr.msk.f32.mxu0 %vm393_vm0, %v3725_v29  ;;  %3113 = vmatprep.subr.bf16.mxu0 %v3112_v8 }
 0x30d   : > { %3115 = vmatpush3.bf16.msra.mxu0 %v3112_v8 }
 0x30e   : > { %2762 = vmatmul.mubr.msk.f32.gmra.mrb[20].mxu1 %vm393_vm0, %v3665_v25 }
 0x30f   : > { %2751 = vmatmul.mubr.msk.f32.gmra.mrb[30].mxu0 %vm393_vm0, %v3736_v10  ;;  %2764 = vmatprep.mubr.msk.f32.mxu1 %vm393_vm0, %v3670_v27 }
 0x310   : > { %2753 = vmatprep.mubr.msk.f32.mxu0 %vm393_vm0, %v3739_v31 }
 0x312   : > { %2765 = vmatmul.mubr.msk.f32.gmra.mrb[22].mxu1 %vm393_vm0, %v3683_v34 }
 0x313   : > { %2754 = vmatmul.mubr.msk.f32.gmra.mrb[32].mxu0 %vm393_vm0, %v3750_v32  ;;  %2767 = vmatprep.mubr.msk.f32.mxu1 %vm393_vm0, %v3686_v37 }
 0x316   : > { %2768 = vmatmul.mubr.msk.f32.gmra.mrb[24].mxu1 %vm393_vm0, %v3698_v4 }
 0x317   : > { %2770 = vmatprep.mubr.msk.f32.mxu1 %vm393_vm0, %v3701_v5 }
 0x31a   : > { %2771 = vmatmul.mubr.msk.f32.gmra.mrb[26].mxu1 %vm393_vm0, %v3711_v18 }
 0x31b   : > { %2773 = vmatprep.mubr.msk.f32.mxu1 %vm393_vm0, %v3714_v19 }
 0x31e   : > { %2774 = vmatmul.mubr.msk.f32.gmra.mrb[28].mxu1 %vm393_vm0, %v3722_v26 }
 0x31f   : > { %2776 = vmatprep.mubr.msk.f32.mxu1 %vm393_vm0, %v3725_v29 }
 0x322   : > { %2777 = vmatmul.mubr.msk.f32.gmra.mrb[30].mxu1 %vm393_vm0, %v3736_v10 }
 0x323   : > { %2779 = vmatprep.mubr.msk.f32.mxu1 %vm393_vm0, %v3739_v31 }
 0x326   : > { %2780 = vmatmul.mubr.msk.f32.gmra.mrb[32].mxu1 %vm393_vm0, %v3750_v32 }
 0x327   : > { %2870 = vmatprep.mubr.f32.mxu1 %v3439_v17  ;;  %v280_v17 = vld [vmem:[#allocation2 + $0xd0] sm:$0xff] }
 0x328   : > { %v3116_v33 = vpack.c.bf16 %v281_v58, %v280_v17 }
 0x32a   : > { %3117 = vmatprep.subr.bf16.mxu0 %v3116_v33 }
 0x32b   : > { %3119 = vmatpush3.bf16.msra.mxu0 %v3116_v33 }
 0x32c   : > { %3121 = vmatprep.subr.bf16.mxu0 %v3120_v40 }
 0x32f   : > { %3123 = vmatpush3.bf16.msra.mxu0 %v3120_v40 }
 0x330   : > { %3125 = vmatprep.subr.bf16.mxu0 %v3124_v11 }
 0x333   : > { %3127 = vmatpush3.bf16.msra.mxu0 %v3124_v11 }
 0x334   : > { %3160 = vmatprep.subr.bf16.mxu0 %v4168_v57 }
 0x3ca   : > { %v2734_v14 = vpop.f32.mrb[18].mxu0 }
 0x3cb   : > { %v1232_v8 = vsub.f32 %v3508_v59, %v2734_v14  ;;  %v1007_v16 = vpop.f32.mrb[19].mxu0 }
 0x3cc   : > { %v1231_v58 = vsub.f32 %v3512_v61, %v1007_v16  ;;  %v1265_v61 = vsub.s32 0, %v3561_v24  ;;  %v1285_v16 = vsub.s32 1, %v3561_v24 }
 0x3ce   : > { %v2737_v20 = vpop.f32.mrb[20].mxu0 }
 0x3cf   : > { %v1234_v22 = vsub.f32 %v3518_v1, %v2737_v20  ;;  %v1017_v17 = vpop.f32.mrb[21].mxu0  ;;  %v3790_v1 = vld [vmem:[%s4160_s3] sm:$0xf] }
 0x3d0   : > { %v1233_v33 = vsub.f32 %v3522_v3, %v1017_v17 }
 0x3d2   : > { %v2740_v35 = vpop.f32.mrb[22].mxu0 }
 0x3d3   : > { %v1236_v39 = vsub.f32 %v3530_v7, %v2740_v35  ;;  %v1027_v40 = vpop.f32.mrb[23].mxu0  ;;  %v3799_v35 = vrot.slane %v3790_v1, %v1285_v16 }
 0x3d4   : > { %v1235_v60 = vsub.f32 %v3534_v9, %v1027_v40 }
 0x3d6   : > { %v2743_v63 = vpop.f32.mrb[24].mxu0 }
 0x3d7   : > { %v1238_v11 = vsub.f32 %v3542_v13, %v2743_v63  ;;  %v1037_v57 = vpop.f32.mrb[25].mxu0  ;;  %v3796_v13 = vrot.slane %v3790_v1, %v1265_v61 }
 0x3d8   : > { %v1237_v59 = vsub.f32 %v3546_v15, %v1037_v57 }
 0x3da   : > { %v2746_v3 = vpop.f32.mrb[26].mxu0 }
 0x3db   : > { %v1240_v14 = vsub.f32 %v3554_v21, %v2746_v3  ;;  %v1047_v7 = vpop.f32.mrb[27].mxu0 }
 0x3dc   : > { %v1239_v9 = vsub.f32 %v3558_v23, %v1047_v7 }
 0x3dd   : > { %v2760_v20 = vpop.f32.mrb[18].mxu1 }
 0x3de   : > { %v1248_v57 = vmul.f32 %v2760_v20, %v1232_v8  ;;  %v2749_v15 = vpop.f32.mrb[28].mxu0  ;;  %v1152_v17 = vpop.f32.mrb[19].mxu1 }
 0x3df   : > { %v1242_v40 = vsub.f32 %v3568_v28, %v2749_v15  ;;  %v1247_v63 = vmul.f32 %v1231_v58, %v1152_v17  ;;  %v1057_v32 = vpop.f32.mrb[29].mxu0 }
 0x3e0   : > { %v1268_v21 = vmul.f32 %v3796_v13, %v1248_v57  ;;  %v1241_v3 = vsub.f32 %v3572_v30, %v1057_v32 }
 0x3e1   : > { %v1267_v23 = vmul.f32 %v3796_v13, %v1247_v63  ;;  %v2763_v7 = vpop.f32.mrb[20].mxu1 }
 0x3e2   : > { %v1250_v61 = vmul.f32 %v2763_v7, %v1234_v22  ;;  %v2752_v24 = vpop.f32.mrb[30].mxu0  ;;  %v1162_v31 = vpop.f32.mrb[21].mxu1  ;;  %v1288_v28 = vadd.f32 %v3799_v35, %v1268_v21 }
 0x3e3   : > { %v1244_v8 = vsub.f32 %v3581_v36, %v2752_v24  ;;  %v1249_v20 = vmul.f32 %v1233_v33, %v1162_v31  ;;  %v1067_v10 = vpop.f32.mrb[31].mxu0  ;;  %v1287_v16 = vadd.f32 %v3799_v35, %v1267_v23 }
 0x3e4   : > { %v1270_v58 = vmul.f32 %v3796_v13, %v1250_v61  ;;  %v1243_v57 = vsub.f32 %v3585_v38, %v1067_v10 }
 0x3e5   : > { %v1269_v30 = vmul.f32 %v3796_v13, %v1249_v20  ;;  %v2766_v32 = vpop.f32.mrb[22].mxu1  ;;  %2814 = vmatprep.mubr.f32.mxu0 %v1287_v16 }
 0x3e6   : > { %v1252_v15 = vmul.f32 %v2766_v32, %v1236_v39  ;;  %v2755_v22 = vpop.f32.mrb[32].mxu0  ;;  %v1172_v17 = vpop.f32.mrb[23].mxu1  ;;  %2815 = vmatmul.mubr.f32.vlgmr.msra.gmra.mrb[34].mxu0 %v1288_v28  ;;  %v1290_v38 = vadd.f32 %v3799_v35, %v1270_v58 }
 0x3e7   : > { %v1246_v24 = vsub.f32 %v3593_v62, %v2755_v22  ;;  %v1251_v36 = vmul.f32 %v1235_v60, %v1172_v17  ;;  %v1077_v31 = vpop.f32.mrb[33].mxu0  ;;  %v1289_v33 = vadd.f32 %v3799_v35, %v1269_v30 }
 0x3e8   : > { %v1272_v63 = vmul.f32 %v3796_v13, %v1252_v15  ;;  %v1245_v21 = vsub.f32 %v3597_v0, %v1077_v31 }
 0x3e9   : > { %v1271_v10 = vmul.f32 %v3796_v13, %v1251_v36  ;;  %v2769_v23 = vpop.f32.mrb[24].mxu1  ;;  %2817 = vmatprep.mubr.f32.mxu0 %v1289_v33 }
 0x3ea   : > { %v1254_v39 = vmul.f32 %v2769_v23, %v1238_v11  ;;  %v1182_v7 = vpop.f32.mrb[25].mxu1  ;;  %2818 = vmatmul.mubr.f32.gmra.mrb[36].mxu0 %v1290_v38  ;;  %v1292_v20 = vadd.f32 %v3799_v35, %v1272_v63 }
 0x3eb   : > { %v1253_v61 = vmul.f32 %v1237_v59, %v1182_v7  ;;  %v1291_v62 = vadd.f32 %v3799_v35, %v1271_v10 }
 0x3ec   : > { %v1274_v60 = vmul.f32 %v3796_v13, %v1254_v39 }
 0x3ed   : > { %v1273_v16 = vmul.f32 %v3796_v13, %v1253_v61  ;;  %v2772_v28 = vpop.f32.mrb[26].mxu1  ;;  %2820 = vmatprep.mubr.f32.mxu0 %v1291_v62 }
 0x3ee   : > { %v1256_v0 = vmul.f32 %v2772_v28, %v1240_v14  ;;  %v1192_v58 = vpop.f32.mrb[27].mxu1  ;;  %2821 = vmatmul.mubr.f32.gmra.mrb[38].mxu0 %v1292_v20  ;;  %v1294_v59 = vadd.f32 %v3799_v35, %v1274_v60 }
 0x3ef   : > { %v1255_v30 = vmul.f32 %v1239_v9, %v1192_v58  ;;  %v1293_v32 = vadd.f32 %v3799_v35, %v1273_v16 }
 0x3f0   : > { %v1276_v11 = vmul.f32 %v3796_v13, %v1256_v0 }
 0x3f1   : > { %v1275_v15 = vmul.f32 %v3796_v13, %v1255_v30  ;;  %v2775_v22 = vpop.f32.mrb[28].mxu1  ;;  %2823 = vmatprep.mubr.f32.mxu0 %v1293_v32 }
 0x3f2   : > { %v1258_v17 = vmul.f32 %v2775_v22, %v1242_v40  ;;  %v1202_v36 = vpop.f32.mrb[29].mxu1  ;;  %2824 = vmatmul.mubr.f32.gmra.mrb[40].mxu0 %v1294_v59  ;;  %v1296_v9 = vadd.f32 %v3799_v35, %v1276_v11 }
 0x3f3   : > { %v1257_v31 = vmul.f32 %v1241_v3, %v1202_v36  ;;  %v1295_v33 = vadd.f32 %v3799_v35, %v1275_v15 }
 0x3f4   : > { %v1278_v14 = vmul.f32 %v3796_v13, %v1258_v17 }
 0x3f5   : > { %v1277_v63 = vmul.f32 %v3796_v13, %v1257_v31  ;;  %v2778_v38 = vpop.f32.mrb[30].mxu1  ;;  %2826 = vmatprep.mubr.f32.mxu0 %v1295_v33 }
 0x3f6   : > { %v1260_v10 = vmul.f32 %v2778_v38, %v1244_v8  ;;  %v1212_v23 = vpop.f32.mrb[31].mxu1  ;;  %2827 = vmatmul.mubr.f32.gmra.mrb[42].mxu0 %v1296_v9  ;;  %v1298_v3 = vadd.f32 %v3799_v35, %v1278_v14 }
 0x3f7   : > { %v1259_v39 = vmul.f32 %v1243_v57, %v1212_v23  ;;  %v1297_v7 = vadd.f32 %v3799_v35, %v1277_v63 }
 0x3f8   : > { %v1280_v40 = vmul.f32 %v3796_v13, %v1260_v10 }
 0x3f9   : > { %v1279_v61 = vmul.f32 %v3796_v13, %v1259_v39  ;;  %v2781_v62 = vpop.f32.mrb[32].mxu1  ;;  %2829 = vmatprep.mubr.f32.mxu0 %v1297_v7 }
 0x3fa   : > { %v1262_v60 = vmul.f32 %v2781_v62, %v1246_v24  ;;  %v1222_v20 = vpop.f32.mrb[33].mxu1  ;;  %2830 = vmatmul.mubr.f32.gmra.mrb[44].mxu0 %v1298_v3  ;;  %v1300_v57 = vadd.f32 %v3799_v35, %v1280_v40  ;;  %v4193_v24 = vmov 0.0  }
 0x3fb   : > { %v1261_v16 = vmul.f32 %v1245_v21, %v1222_v20  ;;  %v1299_v28 = vadd.f32 %v3799_v35, %v1279_v61 }
 0x3fc   : > { %v1282_v8 = vmul.f32 %v3796_v13, %v1262_v60  ;;  %v4194_v60 = vmov 0.0|0.0  }
 0x3fd   : > { %v1281_v0 = vmul.f32 %v3796_v13, %v1261_v16  ;;  %2832 = vmatprep.mubr.f32.mxu0 %v1299_v28 }
 0x3fe   : > { %2833 = vmatmul.mubr.f32.gmra.mrb[46].mxu0 %v1300_v57  ;;  %v1302_v30 = vadd.f32 %v3799_v35, %v1282_v8 }
 0x3ff   : > { %v1301_v58 = vadd.f32 %v3799_v35, %v1281_v0 }
 0x401   : > { %2835 = vmatprep.mubr.f32.mxu0 %v1301_v58 }
 0x402   : > { %2836 = vmatmul.mubr.f32.gmra.mrb[48].mxu0 %v1302_v30 }
 0x403   : > { %2926 = vmatprep.mubr.msk.f32.mxu0 %vm3315_vm1, %v4193_v24 }
 0x4b9   : > { %v2816_v21 = vpop.f32.mrb[34].mxu0 }
 0x4ba   : > { %v1369_v32 = vpop.f32.mrb[35].mxu0 }
 0x4bb   : > { %v3128_v11 = vpack.c.bf16 %v2816_v21, %v1369_v32 }
 0x4bd   : > { %v2819_v59 = vpop.f32.mrb[36].mxu0  ;;  %3129 = vmatprep.subr.bf16.mxu1 %v3128_v11 }
 0x4be   : > { %v1379_v15 = vpop.f32.mrb[37].mxu0  ;;  %3131 = vmatpush3.bf16.msra.mxu1 %v3128_v11 }
 0x4bf   : > { %v3132_v22 = vpack.c.bf16 %v2819_v59, %v1379_v15 }
 0x4c1   : > { %v2822_v13 = vpop.f32.mrb[38].mxu0  ;;  %3133 = vmatprep.subr.bf16.mxu1 %v3132_v22 }
 0x4c2   : > { %v1389_v17 = vpop.f32.mrb[39].mxu0  ;;  %3135 = vmatpush3.bf16.msra.mxu1 %v3132_v22 }
 0x4c3   : > { %v3136_v36 = vpack.c.bf16 %v2822_v13, %v1389_v17 }
 0x4c5   : > { %v2825_v31 = vpop.f32.mrb[40].mxu0  ;;  %3137 = vmatprep.subr.bf16.mxu1 %v3136_v36 }
 0x4c6   : > { %v1399_v35 = vpop.f32.mrb[41].mxu0  ;;  %3139 = vmatpush3.bf16.msra.mxu1 %v3136_v36 }
 0x4c7   : > { %v3140_v33 = vpack.c.bf16 %v2825_v31, %v1399_v35 }
 0x4c9   : > { %v2828_v14 = vpop.f32.mrb[42].mxu0  ;;  %3141 = vmatprep.subr.bf16.mxu1 %v3140_v33 }
 0x4ca   : > { %v1409_v9 = vpop.f32.mrb[43].mxu0  ;;  %3143 = vmatpush3.bf16.msra.mxu1 %v3140_v33 }
 0x4cb   : > { %v3144_v63 = vpack.c.bf16 %v2828_v14, %v1409_v9 }
 0x4cd   : > { %v2831_v38 = vpop.f32.mrb[44].mxu0  ;;  %3145 = vmatprep.subr.bf16.mxu1 %v3144_v63 }
 0x4ce   : > { %v1419_v10 = vpop.f32.mrb[45].mxu0  ;;  %3147 = vmatpush3.bf16.msra.mxu1 %v3144_v63 }
 0x4cf   : > { %v3148_v23 = vpack.c.bf16 %v2831_v38, %v1419_v10 }
 0x4d1   : > { %v2834_v39 = vpop.f32.mrb[46].mxu0  ;;  %3149 = vmatprep.subr.bf16.mxu1 %v3148_v23 }
 0x4d2   : > { %v1429_v7 = vpop.f32.mrb[47].mxu0  ;;  %3151 = vmatpush3.bf16.msra.mxu1 %v3148_v23 }
 0x4d3   : > { %v3152_v40 = vpack.c.bf16 %v2834_v39, %v1429_v7 }
 0x4d5   : > { %v2837_v3 = vpop.f32.mrb[48].mxu0  ;;  %3153 = vmatprep.subr.bf16.mxu1 %v3152_v40 }
 0x4d6   : > { %v1439_v61 = vpop.f32.mrb[49].mxu0  ;;  %3155 = vmatpush3.bf16.msra.mxu1 %v3152_v40 }
 0x4d7   : > { %v3156_v62 = vpack.c.bf16 %v2837_v3, %v1439_v61 }
 0x4d9   : > { %3157 = vmatprep.subr.bf16.mxu1 %v3156_v62 }
 0x4da   : > { %3159 = vmatpush3.bf16.msra.mxu1 %v3156_v62 }
 0x4db   : > { %3184 = vmatprep.subr.bf16.mxu1 %v4194_v60 }
 0x4dd   : > { %2871 = vmatmul.mubr.f32.vlgmr.msra.gmra.mrb[34].mxu1 %v3443_v42 }
 0x4de   : > { %2873 = vmatprep.mubr.f32.mxu1 %v3446_v43 }
 0x4e1   : > { %2874 = vmatmul.mubr.f32.gmra.mrb[36].mxu1 %v3451_v44 }
 0x4e2   : > { %2876 = vmatprep.mubr.f32.mxu1 %v3454_v45 }
 0x4e5   : > { %2877 = vmatmul.mubr.f32.gmra.mrb[38].mxu1 %v3459_v46 }
 0x4e6   : > { %2879 = vmatprep.mubr.f32.mxu1 %v3462_v47 }
 0x4e9   : > { %2880 = vmatmul.mubr.f32.gmra.mrb[40].mxu1 %v3467_v48 }
 0x4ea   : > { %2882 = vmatprep.mubr.f32.mxu1 %v3470_v49 }
 0x4ed   : > { %2883 = vmatmul.mubr.f32.gmra.mrb[42].mxu1 %v3475_v50 }
 0x4ee   : > { %2885 = vmatprep.mubr.f32.mxu1 %v3478_v51 }
 0x4f1   : > { %2886 = vmatmul.mubr.f32.gmra.mrb[44].mxu1 %v3483_v52 }
 0x4f2   : > { %2888 = vmatprep.mubr.f32.mxu1 %v3486_v53 }
 0x4f5   : > { %2889 = vmatmul.mubr.f32.gmra.mrb[46].mxu1 %v3491_v54 }
 0x4f6   : > { %2891 = vmatprep.mubr.f32.mxu1 %v3494_v55 }
 0x4f9   : > { %2892 = vmatmul.mubr.f32.gmra.mrb[48].mxu1 %v3499_v56 }
 0x4fa   : > { %2961 = vmatprep.mubr.msk.f32.mxu1 %vm3315_vm1, %v4193_v24 }
 0x5b0   : > { %v3859_v42 = vpop.f32.mrb[34].mxu1 }
 0x5b1   : > { %v1664_v43 = vmul.f32 %v3859_v42, %v3859_v42  ;;  %v3863_v44 = vpop.f32.mrb[35].mxu1 }
 0x5b2   : > { %v3161_v45 = vpack.c.bf16 %v3859_v42, %v3863_v44  ;;  %v1663_v46 = vmul.f32 %v3863_v44, %v3863_v44 }
 0x5b4   : > { %v3185_v47 = vpack.c.bf16 %v1664_v43, %v1663_v46  ;;  %v3869_v48 = vpop.f32.mrb[36].mxu1  ;;  %3162 = vmatpush3.bf16.msra.mxu0 %v3161_v45  ;;  %v4195_v43 = vmov 0.0625  }
 0x5b5   : > { %v1666_v49 = vmul.f32 %v3869_v48, %v3869_v48  ;;  %v3873_v50 = vpop.f32.mrb[37].mxu1  ;;  %3163 = vmatprep.subr.bf16.mxu0 %v4194_v60 }
 0x5b6   : > { %v3164_v51 = vpack.c.bf16 %v3869_v48, %v3873_v50  ;;  %v1665_v52 = vmul.f32 %v3873_v50, %v3873_v50  ;;  %3186 = vmatpush3.bf16.msra.mxu1 %v3185_v47 }
 0x5b7   : > { %3187 = vmatprep.subr.bf16.mxu1 %v4194_v60 }
 0x5b8   : > { %v3188_v53 = vpack.c.bf16 %v1666_v49, %v1665_v52  ;;  %v3881_v54 = vpop.f32.mrb[38].mxu1  ;;  %3165 = vmatpush3.bf16.msra.mxu0 %v3164_v51 }
 0x5b9   : > { %v1668_v55 = vmul.f32 %v3881_v54, %v3881_v54  ;;  %v3885_v56 = vpop.f32.mrb[39].mxu1  ;;  %3166 = vmatprep.subr.bf16.mxu0 %v4194_v60 }
 0x5ba   : > { %v3167_v20 = vpack.c.bf16 %v3881_v54, %v3885_v56  ;;  %v1667_v16 = vmul.f32 %v3885_v56, %v3885_v56  ;;  %3189 = vmatpush3.bf16.msra.mxu1 %v3188_v53 }
 0x5bb   : > { %3190 = vmatprep.subr.bf16.mxu1 %v4194_v60 }
 0x5bc   : > { %v3191_v28 = vpack.c.bf16 %v1668_v55, %v1667_v16  ;;  %v3893_v8 = vpop.f32.mrb[40].mxu1  ;;  %3168 = vmatpush3.bf16.msra.mxu0 %v3167_v20  ;;  %v4197_v55 = vld [vmem:[#allocation7_spill] sm:$0xff] }
 0x5bd   : > { %v1670_v57 = vmul.f32 %v3893_v8, %v3893_v8  ;;  %v3897_v0 = vpop.f32.mrb[41].mxu1  ;;  %3169 = vmatprep.subr.bf16.mxu0 %v4194_v60 }
 0x5be   : > { %v3170_v58 = vpack.c.bf16 %v3893_v8, %v3897_v0  ;;  %v1669_v30 = vmul.f32 %v3897_v0, %v3897_v0  ;;  %3192 = vmatpush3.bf16.msra.mxu1 %v3191_v28 }
 0x5bf   : > { %3193 = vmatprep.subr.bf16.mxu1 %v4194_v60 }
 0x5c0   : > { %v3194_v24 = vpack.c.bf16 %v1670_v57, %v1669_v30  ;;  %v3905_v21 = vpop.f32.mrb[42].mxu1  ;;  %3171 = vmatpush3.bf16.msra.mxu0 %v3170_v58  ;;  %v4199_v30 = vld [vmem:[#allocation5_spill] sm:$0xff] }
 0x5c1   : > { %v1672_v32 = vmul.f32 %v3905_v21, %v3905_v21  ;;  %v3909_v11 = vpop.f32.mrb[43].mxu1  ;;  %3172 = vmatprep.subr.bf16.mxu0 %v4194_v60 }
 0x5c2   : > { %v3173_v59 = vpack.c.bf16 %v3905_v21, %v3909_v11  ;;  %v1671_v15 = vmul.f32 %v3909_v11, %v3909_v11  ;;  %3195 = vmatpush3.bf16.msra.mxu1 %v3194_v24  ;;  %v2078_v24 = vsub.s32 2, %v4199_v30 }
 0x5c3   : > { %3196 = vmatprep.subr.bf16.mxu1 %v4194_v60 }
 0x5c4   : > { %v3197_v22 = vpack.c.bf16 %v1672_v32, %v1671_v15  ;;  %v3917_v13 = vpop.f32.mrb[44].mxu1  ;;  %3174 = vmatpush3.bf16.msra.mxu0 %v3173_v59  ;;  %v2098_v59 = vsub.s32 3, %v4199_v30 }
 0x5c5   : > { %v1674_v17 = vmul.f32 %v3917_v13, %v3917_v13  ;;  %v3921_v36 = vpop.f32.mrb[45].mxu1  ;;  %3175 = vmatprep.subr.bf16.mxu0 %v4194_v60 }
 0x5c6   : > { %v3176_v31 = vpack.c.bf16 %v3917_v13, %v3921_v36  ;;  %v1673_v35 = vmul.f32 %v3921_v36, %v3921_v36  ;;  %3198 = vmatpush3.bf16.msra.mxu1 %v3197_v22 }
 0x5c7   : > { %3199 = vmatprep.subr.bf16.mxu1 %v4194_v60 }
 0x5c8   : > { %v3200_v33 = vpack.c.bf16 %v1674_v17, %v1673_v35  ;;  %v3929_v14 = vpop.f32.mrb[46].mxu1  ;;  %3177 = vmatpush3.bf16.msra.mxu0 %v3176_v31  ;;  %v4054_v31 = vrot.slane %v3790_v1, %v2078_v24 }
 0x5c9   : > { %v1676_v9 = vmul.f32 %v3929_v14, %v3929_v14  ;;  %v3933_v63 = vpop.f32.mrb[47].mxu1  ;;  %3178 = vmatprep.subr.bf16.mxu0 %v4194_v60 }
 0x5ca   : > { %v3179_v38 = vpack.c.bf16 %v3929_v14, %v3933_v63  ;;  %v1675_v10 = vmul.f32 %v3933_v63, %v3933_v63  ;;  %3201 = vmatpush3.bf16.msra.mxu1 %v3200_v33 }
 0x5cb   : > { %3202 = vmatprep.subr.bf16.mxu1 %v4194_v60 }
 0x5cc   : > { %v3203_v23 = vpack.c.bf16 %v1676_v9, %v1675_v10  ;;  %v3941_v39 = vpop.f32.mrb[48].mxu1  ;;  %3180 = vmatpush3.bf16.msra.mxu0 %v3179_v38 }
 0x5cd   : > { %v1678_v7 = vmul.f32 %v3941_v39, %v3941_v39  ;;  %v3945_v40 = vpop.f32.mrb[49].mxu1  ;;  %3181 = vmatprep.subr.bf16.mxu0 %v4194_v60 }
 0x5ce   : > { %v3182_v3 = vpack.c.bf16 %v3941_v39, %v3945_v40  ;;  %v1677_v61 = vmul.f32 %v3945_v40, %v3945_v40  ;;  %3204 = vmatpush3.bf16.msra.mxu1 %v3203_v23 }
 0x5cf   : > { %3205 = vmatprep.subr.bf16.mxu1 %v4194_v60 }
 0x5d0   : > { %v3206_v62 = vpack.c.bf16 %v1678_v7, %v1677_v61  ;;  %3183 = vmatpush3.bf16.msra.mxu0 %v3182_v3 }
 0x5d2   : > { %3207 = vmatpush3.bf16.msra.mxu1 %v3206_v62 }
 0x5d3   : > { %2927 = vmatmul.mubr.msk.f32.vlgmr.msra.gmra.mrb[50].mxu0 %vm3605_vm4, %v4195_v43 }
 0x5d4   : > { %2966 = vmatprep.mubr.msk.f32.mxu0 %vm393_vm0, %v3620_v12 }
 0x5d5   : > { %2962 = vmatmul.mubr.msk.f32.vlgmr.msra.gmra.mrb[50].mxu1 %vm3605_vm4, %v4195_v43 }
 0x5d6   : > { %3001 = vmatprep.mubr.msk.f32.mxu1 %vm393_vm0, %v3686_v37 }
 0x6a6   : > { %v1659_v45 = vpop.f32.mrb[50].mxu0 }
 0x6a7   : > { %v2928_v46 = vpop.f32.mrb[51].mxu0  ;;  %2964 = vmatprep.subr.mxu0 %v1659_v45  ;;  %v1749_v60 = vmul.f32 %v1659_v45, %v1659_v45 }
 0x6a8   : > { %v1745_v47 = vpop.f32.mrb[50].mxu1  ;;  %2965 = vmatpush3.msra.mxu0 %v1659_v45 }
 0x6a9   : > { %v1750_v49 = vsub.f32 %v1745_v47, %v1749_v60  ;;  %v2963_v51 = vpop.f32.mrb[51].mxu1  ;;  %2967 = vmatmul.mubr.msk.f32.vlgmr.msra.gmra.mrb[52].mxu0 %vm393_vm0, %v3641_v41 }
 0x6aa   : > { %2969 = vmatprep.mubr.msk.f32.mxu0 %vm393_vm0, %v3644_v2 }
 0x6ab   : > { %v1751_v52 = vmax.f32 %v1750_v49, 0.0 }
 0x6ad   : > { %v1752_v6 = vadd.f32 1e-05, %v1751_v52  ;;  %2970 = vmatmul.mubr.msk.f32.gmra.mrb[54].mxu0 %vm393_vm0, %v3665_v25 }
 0x6ae   : > { %2972 = vmatprep.mubr.msk.f32.mxu0 %vm393_vm0, %v3670_v27 }
 0x6af   : > { %3237 = vrsqrt.f32 %v1752_v6 }
 0x6b1   : > { %2973 = vmatmul.mubr.msk.f32.gmra.mrb[56].mxu0 %vm393_vm0, %v3683_v34 }
 0x6b2   : > { %2975 = vmatprep.mubr.msk.f32.mxu0 %vm393_vm0, %v3686_v37  ;;  %v4196_v37 = vld [vmem:[#allocation6_spill] sm:$0xff] }
 0x6b5   : > { %2976 = vmatmul.mubr.msk.f32.gmra.mrb[58].mxu0 %vm393_vm0, %v3698_v4 }
 0x6b6   : > { %2978 = vmatprep.mubr.msk.f32.mxu0 %vm393_vm0, %v3701_v5 }
 0x6b9   : > { %v3238_v53 = vpop.eup %3237  ;;  %2979 = vmatmul.mubr.msk.f32.gmra.mrb[60].mxu0 %vm393_vm0, %v3711_v18 }
 0x6ba   : > { %2990 = vmatprep.subr.mxu0 %v3238_v53  ;;  %3208 = vmatprep.subr.mxu1 %v3238_v53 }
 0x6bb   : > { %2991 = vmatpush3.msra.mxu0 %v3238_v53  ;;  %3209 = vmatpush3.msra.mxu1 %v3238_v53 }
 0x6bc   : > { %2981 = vmatprep.mubr.msk.f32.mxu0 %vm393_vm0, %v3714_v19  ;;  %3002 = vmatmul.mubr.msk.f32.vlgmr.msra.gmra.mrb[52].mxu1 %vm393_vm0, %v3698_v4  ;;  %v4198_v4 = vld [vmem:[#allocation8_spill] sm:$0xff] }
 0x6bd   : > { %2982 = vmatmul.mubr.msk.f32.gmra.mrb[62].mxu0 %vm393_vm0, %v3722_v26  ;;  %3004 = vmatprep.mubr.msk.f32.mxu1 %vm393_vm0, %v3701_v5 }
 0x6be   : > { %2984 = vmatprep.mubr.msk.f32.mxu0 %vm393_vm0, %v3725_v29 }
 0x6c0   : > { %3005 = vmatmul.mubr.msk.f32.gmra.mrb[54].mxu1 %vm393_vm0, %v3711_v18 }
 0x6c1   : > { %2985 = vmatmul.mubr.msk.f32.gmra.mrb[64].mxu0 %vm393_vm0, %v4196_v37  ;;  %3007 = vmatprep.mubr.msk.f32.mxu1 %vm393_vm0, %v3714_v19 }
 0x6c2   : > { %2987 = vmatprep.mubr.msk.f32.mxu0 %vm393_vm0, %v4197_v55 }
 0x6c4   : > { %3008 = vmatmul.mubr.msk.f32.gmra.mrb[56].mxu1 %vm393_vm0, %v3722_v26 }
 0x6c5   : > { %2988 = vmatmul.mubr.msk.f32.gmra.mrb[66].mxu0 %vm393_vm0, %v4198_v4  ;;  %3010 = vmatprep.mubr.msk.f32.mxu1 %vm393_vm0, %v3725_v29 }
 0x6c6   : > { %2992 = vmatprep.mubr.msk.f32.mxu0 %vm393_vm0, %v3620_v12 }
 0x6c8   : > { %3011 = vmatmul.mubr.msk.f32.gmra.mrb[58].mxu1 %vm393_vm0, %v4196_v37 }
 0x6c9   : > { %2993 = vmatmul.mubr.msk.f32.vlgmr.msra.gmra.mrb[68].mxu0 %vm393_vm0, %v3641_v41  ;;  %3013 = vmatprep.mubr.msk.f32.mxu1 %vm393_vm0, %v4197_v55 }
 0x6ca   : > { %2995 = vmatprep.mubr.msk.f32.mxu0 %vm393_vm0, %v3644_v2 }
 0x6cc   : > { %3014 = vmatmul.mubr.msk.f32.gmra.mrb[60].mxu1 %vm393_vm0, %v4198_v4 }
 0x6cd   : > { %2996 = vmatmul.mubr.msk.f32.gmra.mrb[70].mxu0 %vm393_vm0, %v3665_v25 }
 0x6ce   : > { %2998 = vmatprep.mubr.msk.f32.mxu0 %vm393_vm0, %v3670_v27 }
 0x6d1   : > { %2999 = vmatmul.mubr.msk.f32.gmra.mrb[72].mxu0 %vm393_vm0, %v3683_v34  ;;  %vm2132_vm0 = vcmask 31744  }
 0x77c   : > { %v4023_v12 = vpop.f32.mrb[52].mxu0 }
 0x77d   : > { %v2045_v41 = vsub.f32 %v3859_v42, %v4023_v12  ;;  %v4027_v5 = vpop.f32.mrb[53].mxu0 }
 0x77e   : > { %v2044_v2 = vsub.f32 %v3863_v44, %v4027_v5 }
 0x780   : > { %v4031_v18 = vpop.f32.mrb[54].mxu0 }
 0x781   : > { %v2047_v25 = vsub.f32 %v3869_v48, %v4031_v18  ;;  %v4035_v19 = vpop.f32.mrb[55].mxu0 }
 0x782   : > { %v2046_v27 = vsub.f32 %v3873_v50, %v4035_v19 }
 0x784   : > { %v4039_v34 = vpop.f32.mrb[56].mxu0 }
 0x785   : > { %v2049_v26 = vsub.f32 %v3881_v54, %v4039_v34  ;;  %v4043_v29 = vpop.f32.mrb[57].mxu0 }
 0x786   : > { %v2048_v20 = vsub.f32 %v3885_v56, %v4043_v29 }
 0x788   : > { %v2977_v16 = vpop.f32.mrb[58].mxu0 }
 0x789   : > { %v2051_v28 = vsub.f32 %v3893_v8, %v2977_v16  ;;  %v1850_v57 = vpop.f32.mrb[59].mxu0  ;;  %v4057_v8 = vrot.slane %v3790_v1, %v2098_v59 }
 0x78a   : > { %v2050_v58 = vsub.f32 %v3897_v0, %v1850_v57 }
 0x78c   : > { %v2980_v32 = vpop.f32.mrb[60].mxu0 }
 0x78d   : > { %v2053_v15 = vsub.f32 %v3905_v21, %v2980_v32  ;;  %v1860_v22 = vpop.f32.mrb[61].mxu0 }
 0x78e   : > { %v2052_v17 = vsub.f32 %v3909_v11, %v1860_v22 }
 0x78f   : > { %v3003_v35 = vpop.f32.mrb[52].mxu1 }
 0x790   : > { %v2067_v33 = vmul.f32 %v3003_v35, %v2051_v28  ;;  %v2983_v9 = vpop.f32.mrb[62].mxu0  ;;  %v1995_v0 = vpop.f32.mrb[53].mxu1 }
 0x791   : > { %v2055_v38 = vsub.f32 %v3917_v13, %v2983_v9  ;;  %v2066_v10 = vmul.f32 %v2050_v58, %v1995_v0  ;;  %v1870_v23 = vpop.f32.mrb[63].mxu0 }
 0x792   : > { %v2087_v7 = vmul.f32 %v4054_v31, %v2067_v33  ;;  %v2054_v21 = vsub.f32 %v3921_v36, %v1870_v23 }
 0x793   : > { %v2086_v11 = vmul.f32 %v4054_v31, %v2066_v10  ;;  %v3006_v3 = vpop.f32.mrb[54].mxu1 }
 0x794   : > { %v2107_v61 = vadd.f32 %v4057_v8, %v2087_v7  ;;  %v2069_v62 = vmul.f32 %v3006_v3, %v2053_v15  ;;  %v2986_v43 = vpop.f32.mrb[64].mxu0  ;;  %v2005_v45 = vpop.f32.mrb[55].mxu1 }
 0x795   : > { %v2106_v1 = vadd.f32 %v4057_v8, %v2086_v11  ;;  %v2057_v46 = vsub.f32 %v3929_v14, %v2986_v43  ;;  %v2068_v60 = vmul.f32 %v2052_v17, %v2005_v45  ;;  %v1880_v13 = vpop.f32.mrb[65].mxu0 }
 0x796   : > { %3239 = vtanh.f32 %v2107_v61  ;;  %v2089_v47 = vmul.f32 %v4054_v31, %v2069_v62  ;;  %v2056_v49 = vsub.f32 %v3933_v63, %v1880_v13 }
 0x797   : > { %3241 = vtanh.f32 %v2106_v1  ;;  %v2088_v36 = vmul.f32 %v4054_v31, %v2068_v60  ;;  %v3009_v51 = vpop.f32.mrb[56].mxu1 }
 0x798   : > { %v2109_v52 = vadd.f32 %v4057_v8, %v2089_v47  ;;  %v2071_v6 = vmul.f32 %v3009_v51, %v2055_v38  ;;  %v2989_v53 = vpop.f32.mrb[66].mxu0  ;;  %v2015_v37 = vpop.f32.mrb[57].mxu1 }
 0x799   : > { %v2108_v55 = vadd.f32 %v4057_v8, %v2088_v36  ;;  %v2059_v14 = vsub.f32 %v3941_v39, %v2989_v53  ;;  %v2070_v4 = vmul.f32 %v2054_v21, %v2015_v37  ;;  %v1890_v16 = vpop.f32.mrb[67].mxu0 }
 0x79a   : > { %3243 = vtanh.f32 %v2109_v52  ;;  %v2091_v28 = vmul.f32 %v4054_v31, %v2071_v6  ;;  %v2058_v63 = vsub.f32 %v3945_v40, %v1890_v16 }
 0x79b   : > { %3245 = vtanh.f32 %v2108_v55  ;;  %v2090_v57 = vmul.f32 %v4054_v31, %v2070_v4  ;;  %v3012_v58 = vpop.f32.mrb[58].mxu1 }
 0x79c   : > { %v2111_v30 = vadd.f32 %v4057_v8, %v2091_v28  ;;  %v2073_v24 = vmul.f32 %v3012_v58, %v2057_v46  ;;  %v2994_v32 = vpop.f32.mrb[68].mxu0  ;;  %v2025_v59 = vpop.f32.mrb[59].mxu1 }
 0x79d   : > { %v2110_v15 = vadd.f32 %v4057_v8, %v2090_v57  ;;  %v2061_v39 = vmul.f32 %v2994_v32, %v2045_v41  ;;  %v2072_v22 = vmul.f32 %v2056_v49, %v2025_v59  ;;  %v1965_v17 = vpop.f32.mrb[69].mxu0 }
 0x79e   : > { %3247 = vtanh.f32 %v2111_v30  ;;  %v2093_v40 = vmul.f32 %v4054_v31, %v2073_v24  ;;  %v2060_v35 = vmul.f32 %v2044_v2, %v1965_v17 }
 0x79f   : > { %3249 = vtanh.f32 %v2110_v15  ;;  %v2081_v42 = vmul.f32 %v4054_v31, %v2061_v39  ;;  %v2092_v12 = vmul.f32 %v4054_v31, %v2072_v22  ;;  %v3015_v41 = vpop.f32.mrb[60].mxu1 }
 0x7a0   : > { %v3240_v33 = vpop.eup %3239  ;;  %v2113_v9 = vadd.f32 %v4057_v8, %v2093_v40  ;;  %v2080_v0 = vmul.f32 %v4054_v31, %v2060_v35  ;;  %v2075_v38 = vmul.f32 %v3015_v41, %v2059_v14  ;;  %v2997_v10 = vpop.f32.mrb[70].mxu0 }
 0x7a1   : > { %v2035_v23 = vpop.f32.mrb[61].mxu1  ;;  %v3242_v7 = vpop.eup %3241  ;;  %2140 = vst.msk [vmem:[%s4085_s21 + $0x38] sm:$0xff] %vm2132_vm0, %v3240_v33  ;;  %v2101_v44 = vadd.f32 %v4057_v8, %v2081_v42  ;;  %v2112_v5 = vadd.f32 %v4057_v8, %v2092_v12  ;;  %v2063_v2 = vmul.f32 %v2997_v10, %v2047_v25 }
 0x7a2   : > { %v2074_v21 = vmul.f32 %v2058_v63, %v2035_v23  ;;  %v1975_v11 = vpop.f32.mrb[71].mxu0  ;;  %2139 = vst.msk [vmem:[%s4085_s21 + $0x30] sm:$0xff] %vm2132_vm0, %v3242_v7  ;;  %3251 = vtanh.f32 %v2113_v9  ;;  %v2100_v3 = vadd.f32 %v4057_v8, %v2080_v0  ;;  %v2095_v61 = vmul.f32 %v4054_v31, %v2075_v38 }
 0x7a3   : > { %v2062_v62 = vmul.f32 %v2046_v27, %v1975_v11  ;;  %3253 = vtanh.f32 %v2101_v44  ;;  %v2083_v43 = vmul.f32 %v4054_v31, %v2063_v2 }
 0x7a4   : > { %v2094_v48 = vmul.f32 %v4054_v31, %v2074_v21  ;;  %v3244_v18 = vpop.eup %3243  ;;  %3255 = vtanh.f32 %v2112_v5  ;;  %v2115_v25 = vadd.f32 %v4057_v8, %v2095_v61  ;;  %v3000_v1 = vpop.f32.mrb[72].mxu0 }
 0x7a5   : > { %v2082_v45 = vmul.f32 %v4054_v31, %v2062_v62  ;;  %v3246_v46 = vpop.eup %3245  ;;  %2142 = vst.msk [vmem:[%s4085_s21 + $0x48] sm:$0xff] %vm2132_vm0, %v3244_v18  ;;  %3257 = vtanh.f32 %v2100_v3  ;;  %v2103_v50 = vadd.f32 %v4057_v8, %v2083_v43  ;;  %v2065_v27 = vmul.f32 %v3000_v1, %v2049_v26  ;;  %v1985_v60 = vpop.f32.mrb[73].mxu0 }
 0x7a6   : > { %v2114_v19 = vadd.f32 %v4057_v8, %v2094_v48  ;;  %2141 = vst.msk [vmem:[%s4085_s21 + $0x40] sm:$0xff] %vm2132_vm0, %v3246_v46  ;;  %3259 = vtanh.f32 %v2115_v25  ;;  %v2064_v47 = vmul.f32 %v2048_v20, %v1985_v60 }
 0x7a7   : > { %v2102_v13 = vadd.f32 %v4057_v8, %v2082_v45  ;;  %3261 = vtanh.f32 %v2103_v50  ;;  %v2085_v49 = vmul.f32 %v4054_v31, %v2065_v27 }
 0x7a8   : > { %v3248_v36 = vpop.eup %3247  ;;  %3263 = vtanh.f32 %v2114_v19  ;;  %v2084_v54 = vmul.f32 %v4054_v31, %v2064_v47 }
 0x7a9   : > { %v3250_v34 = vpop.eup %3249  ;;  %2144 = vst.msk [vmem:[%s4085_s21 + $0x58] sm:$0xff] %vm2132_vm0, %v3248_v36  ;;  %3265 = vtanh.f32 %v2102_v13  ;;  %v2105_v26 = vadd.f32 %v4057_v8, %v2085_v49 }
 0x7aa   : > { %2143 = vst.msk [vmem:[%s4085_s21 + $0x50] sm:$0xff] %vm2132_vm0, %v3250_v34  ;;  %v2104_v56 = vadd.f32 %v4057_v8, %v2084_v54 }
 0x7ab   : > { %3267 = vtanh.f32 %v2105_v26 }
 0x7ac   : > { %v3252_v29 = vpop.eup %3251  ;;  %3269 = vtanh.f32 %v2104_v56 }
 0x7ad   : > { %v3254_v20 = vpop.eup %3253  ;;  %2146 = vst.msk [vmem:[%s4085_s21 + $0x68] sm:$0xff] %vm2132_vm0, %v3252_v29 }
 0x7ae   : > { %v3256_v31 = vpop.eup %3255  ;;  %2134 = vst.msk [vmem:[%s4085_s21 + $0x8] sm:$0xff] %vm2132_vm0, %v3254_v20 }
 0x7af   : > { %v3258_v51 = vpop.eup %3257  ;;  %2145 = vst.msk [vmem:[%s4085_s21 + $0x60] sm:$0xff] %vm2132_vm0, %v3256_v31 }
 0x7b0   : > { %v3260_v52 = vpop.eup %3259  ;;  %2133 = vst.msk [vmem:[%s4085_s21] sm:$0xff] %vm2132_vm0, %v3258_v51 }
 0x7b1   : > { %v3262_v8 = vpop.eup %3261  ;;  %2148 = vst.msk [vmem:[%s4085_s21 + $0x78] sm:$0xff] %vm2132_vm0, %v3260_v52 }
 0x7b2   : > { %v3264_v6 = vpop.eup %3263  ;;  %2136 = vst.msk [vmem:[%s4085_s21 + $0x18] sm:$0xff] %vm2132_vm0, %v3262_v8 }
 0x7b3   : > { %v3266_v53 = vpop.eup %3265  ;;  %2147 = vst.msk [vmem:[%s4085_s21 + $0x70] sm:$0xff] %vm2132_vm0, %v3264_v6 }
 0x7b4   : > { %2135 = vst.msk [vmem:[%s4085_s21 + $0x10] sm:$0xff] %vm2132_vm0, %v3266_v53 }
 0x7b5   : > { %v3268_v37 = vpop.eup %3267 }
 0x7b6   : > { %v3270_v55 = vpop.eup %3269  ;;  %2138 = vst.msk [vmem:[%s4085_s21 + $0x28] sm:$0xff] %vm2132_vm0, %v3268_v37 }
 0x7b7   : > { %2137 = vst.msk [vmem:[%s4085_s21 + $0x20] sm:$0xff] %vm2132_vm0, %v3270_v55 }
 0x7b8 PF: > { %s15_s15 = sadd.s32 1, %s3309_s15  }
 0x7b9   : > { %p12_p5 = scmp.ge.s32.totalorder %s15_s15, 4  }
 0x7bb   :  { %14 = sbr.rel (!%p12_p5) target bundleno = 1 (0x1), region = 75 }
 0x7c2   :  { %2171 = vsyncpa [#allocation3], 1 }
 0x7c3   :  { %2173 = vsyncpa [#allocation3 + $0x1], 1 }

</bundles_post_ra>
